<compile_context>
chip_gen: v6e
topology: v6e:2x2x1
jax: 0.10.0
libtpu: 0.0.40
codegen_flags: <defaults>
</compile_context>

<pallas_src>
import jax
import jax.numpy as jnp
from jax.experimental import pallas as pl
from jax.experimental.pallas import tpu as pltpu

INPUT_DIM = 28 * 28          # 784
HIDDEN_DIM = 500             # logical hidden size (PyTorch module)
HIDDEN_PAD = 512             # lane-dense padded hidden size
LATENT_DIM = 2
HEAD_PAD = 128               # padded fused-head width (mu | logvar | zeros)
BIAS_PACK = 2 * HIDDEN_PAD + HEAD_PAD   # 1152


def _round_up(x, m):
    return ((x + m - 1) // m) * m


def encoder_kernel(x_ref, w1_ref, w2_ref, wh_ref, b_ref, out_ref):
    # Packed biases: [b1 (512) | b2 (512) | b_head (128)] -- static, lane-aligned slices.
    b1 = b_ref[:, 0:HIDDEN_PAD]
    b2 = b_ref[:, HIDDEN_PAD:2 * HIDDEN_PAD]
    bh = b_ref[:, 2 * HIDDEN_PAD:2 * HIDDEN_PAD + HEAD_PAD]

    # fc1 + relu  (bf16 MXU inputs, f32 accumulation)
    xb = x_ref[...].astype(jnp.bfloat16)
    h = jnp.dot(xb, w1_ref[...], preferred_element_type=jnp.float32) + b1
    h = jnp.maximum(h, 0.0).astype(jnp.bfloat16)

    # fc2 + relu
    h = jnp.dot(h, w2_ref[...], preferred_element_type=jnp.float32) + b2
    h = jnp.maximum(h, 0.0).astype(jnp.bfloat16)

    # fused mu/logvar head -> one lane-dense (TM, 128) store
    out = jnp.dot(h, wh_ref[...], preferred_element_type=jnp.float32) + bh
    out_ref[...] = out.astype(out_ref.dtype)


def encoder_forward(x, params):
    """x: (B, INPUT_DIM) float32 -> (mu, logvar): each (B, LATENT_DIM) float32."""
    B = x.shape[0]
    # Batch tile: 256 rows for large batches (multiple of 128 -> good MXU utilization on
    # all of v5e/v6e/v7x); for small batches just round up to a sublane multiple.
    TM = 256 if B >= 256 else _round_up(B, 8)
    n_blocks = pl.cdiv(B, TM)
    B_pad = n_blocks * TM
    if B_pad != B:
        x = jnp.pad(x, ((0, B_pad - B), (0, 0)))

    out = pl.pallas_call(
        encoder_kernel,
        out_shape=jax.ShapeDtypeStruct((B_pad, HEAD_PAD), jnp.float32),
        grid=(n_blocks,),
        in_specs=[
            pl.BlockSpec((TM, INPUT_DIM), lambda i: (i, 0)),            # x tile (pipelined)
            pl.BlockSpec((INPUT_DIM, HIDDEN_PAD), lambda i: (0, 0)),    # w1 (resident)
            pl.BlockSpec((HIDDEN_PAD, HIDDEN_PAD), lambda i: (0, 0)),   # w2 (resident)
            pl.BlockSpec((HIDDEN_PAD, HEAD_PAD), lambda i: (0, 0)),     # fused head (resident)
            pl.BlockSpec((1, BIAS_PACK), lambda i: (0, 0)),             # packed biases
        ],
        out_specs=pl.BlockSpec((TM, HEAD_PAD), lambda i: (i, 0)),
        compiler_params=pltpu.CompilerParams(
            dimension_semantics=("parallel",),
            vmem_limit_bytes=16 << 20,
        ),
    )(x, params["w1"], params["w2"], params["w_head"], params["b_packed"])

    mu = out[:B, 0:LATENT_DIM]
    logvar = out[:B, LATENT_DIM:2 * LATENT_DIM]
    return mu, logvar


def init_params(key):
    """nn.Linear-style U(-1/sqrt(fan_in), 1/sqrt(fan_in)) init (true fan_in, pre-padding).

    Returns (kernel_params, ref_params):
      kernel_params: padded, head-fused, bf16 weights + packed f32 biases (kernel layout).
      ref_params:    unpadded f32 weights/biases (original module layout, (in, out))."""
    def linear(k, fan_in, fan_out):
        kw, kb = jax.random.split(k)
        bound = 1.0 / (fan_in ** 0.5)
        w = jax.random.uniform(kw, (fan_in, fan_out), jnp.float32, -bound, bound)
        b = jax.random.uniform(kb, (fan_out,), jnp.float32, -bound, bound)
        return w, b

    k1, k2, k3, k4 = jax.random.split(key, 4)
    w1, b1 = linear(k1, INPUT_DIM, HIDDEN_DIM)
    w2, b2 = linear(k2, HIDDEN_DIM, HIDDEN_DIM)
    w_mu, b_mu = linear(k3, HIDDEN_DIM, LATENT_DIM)
    w_lv, b_lv = linear(k4, HIDDEN_DIM, LATENT_DIM)

    # Zero-pad to lane-dense shapes; fuse the two heads. Padded lanes are exactly zero so
    # the math is unchanged.
    w1p = jnp.zeros((INPUT_DIM, HIDDEN_PAD), jnp.float32).at[:, :HIDDEN_DIM].set(w1)
    w2p = jnp.zeros((HIDDEN_PAD, HIDDEN_PAD), jnp.float32).at[:HIDDEN_DIM, :HIDDEN_DIM].set(w2)
    whp = (jnp.zeros((HIDDEN_PAD, HEAD_PAD), jnp.float32)
           .at[:HIDDEN_DIM, 0:LATENT_DIM].set(w_mu)
           .at[:HIDDEN_DIM, LATENT_DIM:2 * LATENT_DIM].set(w_lv))

    b1p = jnp.zeros((HIDDEN_PAD,), jnp.float32).at[:HIDDEN_DIM].set(b1)
    b2p = jnp.zeros((HIDDEN_PAD,), jnp.float32).at[:HIDDEN_DIM].set(b2)
    bhp = (jnp.zeros((HEAD_PAD,), jnp.float32)
           .at[0:LATENT_DIM].set(b_mu)
           .at[LATENT_DIM:2 * LATENT_DIM].set(b_lv))
    b_packed = jnp.concatenate([b1p, b2p, bhp])[None, :]   # (1, 1152)

    kernel_params = {
        "w1": w1p.astype(jnp.bfloat16),
        "w2": w2p.astype(jnp.bfloat16),
        "w_head": whp.astype(jnp.bfloat16),
        "b_packed": b_packed,
    }
    ref_params = {"w1": w1, "b1": b1, "w2": w2, "b2": b2,
                  "w_mu": w_mu, "b_mu": b_mu, "w_lv": w_lv, "b_lv": b_lv}
    return kernel_params, ref_params


def encoder_reference_bf16(x, kp):
    """Bit-faithful reference for the kernel's mixed-precision math (bf16 inputs, f32 acc)."""
    w1 = kp["w1"].astype(jnp.float32)
    w2 = kp["w2"].astype(jnp.float32)
    wh = kp["w_head"].astype(jnp.float32)
    b = kp["b_packed"][0]
    b1 = b[0:HIDDEN_PAD]
    b2 = b[HIDDEN_PAD:2 * HIDDEN_PAD]
    bh = b[2 * HIDDEN_PAD:2 * HIDDEN_PAD + HEAD_PAD]

    hp = jax.lax.Precision.HIGHEST
    xb = x.astype(jnp.bfloat16).astype(jnp.float32)
    h = jnp.maximum(jnp.dot(xb, w1, precision=hp) + b1, 0.0)
    h = h.astype(jnp.bfloat16).astype(jnp.float32)
    h = jnp.maximum(jnp.dot(h, w2, precision=hp) + b2, 0.0)
    h = h.astype(jnp.bfloat16).astype(jnp.float32)
    out = jnp.dot(h, wh, precision=hp) + bh
    return out[:, 0:LATENT_DIM], out[:, LATENT_DIM:2 * LATENT_DIM]


def encoder_reference_f32(x, rp):
    """Full-f32 reference matching the original PyTorch module exactly."""
    hp = jax.lax.Precision.HIGHEST
    h = jnp.maximum(jnp.dot(x, rp["w1"], precision=hp) + rp["b1"], 0.0)
    h = jnp.maximum(jnp.dot(h, rp["w2"], precision=hp) + rp["b2"], 0.0)
    mu = jnp.dot(h, rp["w_mu"], precision=hp) + rp["b_mu"]
    logvar = jnp.dot(h, rp["w_lv"], precision=hp) + rp["b_lv"]
    return mu, logvar


if __name__ == "__main__":
    key = jax.random.PRNGKey(0)
    k_params, k_x = jax.random.split(key)

    kernel_params, ref_params = init_params(k_params)

    B = 8
    x = jax.random.normal(k_x, (B, INPUT_DIM), jnp.float32)

    mu, logvar = jax.jit(encoder_forward)(x, kernel_params)
    mu, logvar = jax.block_until_ready((mu, logvar))

    assert mu.shape == (B, LATENT_DIM) and logvar.shape == (B, LATENT_DIM)

    # Tight check against the bf16-weight reference (same quantized math as the kernel).
    mu_b, lv_b = encoder_reference_bf16(x, kernel_params)
    assert jnp.allclose(mu, mu_b, atol=2e-3, rtol=2e-3), float(jnp.max(jnp.abs(mu - mu_b)))
    assert jnp.allclose(logvar, lv_b, atol=2e-3, rtol=2e-3), float(jnp.max(jnp.abs(logvar - lv_b)))

    # Sanity check against the original full-f32 module semantics (difference = bf16
    # weight/activation quantization only).
    mu_f, lv_f = encoder_reference_f32(x, ref_params)
    assert jnp.allclose(mu, mu_f, atol=5e-2, rtol=5e-2), float(jnp.max(jnp.abs(mu - mu_f)))
    assert jnp.allclose(logvar, lv_f, atol=5e-2, rtol=5e-2), float(jnp.max(jnp.abs(logvar - lv_f)))

    print("KERNEL_OK")
</pallas_src>

<mosaic_0001>
module attributes {stable_mosaic.version = 11 : i64} {
  func.func @encoder_kernel(%arg0: i32, %arg1: memref<8x784xf32, #tpu.memory_space<vmem>>, %arg2: memref<784x512xbf16, #tpu.memory_space<vmem>>, %arg3: memref<512x512xbf16, #tpu.memory_space<vmem>>, %arg4: memref<512x128xbf16, #tpu.memory_space<vmem>>, %arg5: memref<1x1152xf32, #tpu.memory_space<vmem>>, %arg6: memref<8x128xf32, #tpu.memory_space<vmem>>) attributes {dimension_semantics = [#tpu.dimension_semantics<parallel>], iteration_bounds = array<i64: 1>, scalar_prefetch = 0 : i64, scratch_operands = 0 : i64, tpu.core_type = #tpu.core_type<tc>, window_params = [{transform_indices = @transform_0, window_bounds = array<i64: 8, 784>}, {pipeline_mode = #tpu.pipeline_mode<synchronous>, transform_indices = @transform_1, window_bounds = array<i64: 784, 512>}, {pipeline_mode = #tpu.pipeline_mode<synchronous>, transform_indices = @transform_2, window_bounds = array<i64: 512, 512>}, {pipeline_mode = #tpu.pipeline_mode<synchronous>, transform_indices = @transform_3, window_bounds = array<i64: 512, 128>}, {pipeline_mode = #tpu.pipeline_mode<synchronous>, transform_indices = @transform_4, window_bounds = array<i64: 1, 1152>}, {transform_indices = @transform_5, window_bounds = array<i64: 8, 128>}]} {
    %c0 = arith.constant 0 : index
    %c0_0 = arith.constant 0 : index
    %0 = vector.load %arg5[%c0, %c0_0] : memref<1x1152xf32, #tpu.memory_space<vmem>>, vector<1x512xf32>
    %c0_1 = arith.constant 0 : index
    %c512 = arith.constant 512 : index
    %1 = vector.load %arg5[%c0_1, %c512] : memref<1x1152xf32, #tpu.memory_space<vmem>>, vector<1x512xf32>
    %c0_2 = arith.constant 0 : index
    %c1024 = arith.constant 1024 : index
    %2 = vector.load %arg5[%c0_2, %c1024] : memref<1x1152xf32, #tpu.memory_space<vmem>>, vector<1x128xf32>
    %c0_3 = arith.constant 0 : index
    %c0_4 = arith.constant 0 : index
    %3 = vector.load %arg1[%c0_3, %c0_4] : memref<8x784xf32, #tpu.memory_space<vmem>>, vector<8x784xf32>
    %4 = arith.truncf %3 : vector<8x784xf32> to vector<8x784xbf16>
    %c0_5 = arith.constant 0 : index
    %c0_6 = arith.constant 0 : index
    %5 = vector.load %arg2[%c0_5, %c0_6] : memref<784x512xbf16, #tpu.memory_space<vmem>>, vector<784x512xbf16>
    %cst = arith.constant dense<0.000000e+00> : vector<8x512xf32>
    %6 = tpu.matmul %4, %5, %cst {dimension_numbers = #tpu.dot_dimension_numbers<[1], [0], [0], [1], [0, 0, 1, 1], [], []>} : vector<8x784xbf16>, vector<784x512xbf16>, vector<8x512xf32> -> vector<8x512xf32>
    %7 = vector.broadcast %0 : vector<1x512xf32> to vector<8x512xf32>
    %8 = arith.addf %6, %7 : vector<8x512xf32>
    %cst_7 = arith.constant 0.000000e+00 : f32
    %9 = vector.broadcast %cst_7 : f32 to vector<8x512xf32>
    %10 = arith.maximumf %8, %9 : vector<8x512xf32>
    %11 = arith.truncf %10 : vector<8x512xf32> to vector<8x512xbf16>
    %c0_8 = arith.constant 0 : index
    %c0_9 = arith.constant 0 : index
    %12 = vector.load %arg3[%c0_8, %c0_9] : memref<512x512xbf16, #tpu.memory_space<vmem>>, vector<512x512xbf16>
    %cst_10 = arith.constant dense<0.000000e+00> : vector<8x512xf32>
    %13 = tpu.matmul %11, %12, %cst_10 {dimension_numbers = #tpu.dot_dimension_numbers<[1], [0], [0], [1], [0, 0, 1, 1], [], []>} : vector<8x512xbf16>, vector<512x512xbf16>, vector<8x512xf32> -> vector<8x512xf32>
    %14 = vector.broadcast %1 : vector<1x512xf32> to vector<8x512xf32>
    %15 = arith.addf %13, %14 : vector<8x512xf32>
    %cst_11 = arith.constant 0.000000e+00 : f32
    %16 = vector.broadcast %cst_11 : f32 to vector<8x512xf32>
    %17 = arith.maximumf %15, %16 : vector<8x512xf32>
    %18 = arith.truncf %17 : vector<8x512xf32> to vector<8x512xbf16>
    %c0_12 = arith.constant 0 : index
    %c0_13 = arith.constant 0 : index
    %19 = vector.load %arg4[%c0_12, %c0_13] : memref<512x128xbf16, #tpu.memory_space<vmem>>, vector<512x128xbf16>
    %cst_14 = arith.constant dense<0.000000e+00> : vector<8x128xf32>
    %20 = tpu.matmul %18, %19, %cst_14 {dimension_numbers = #tpu.dot_dimension_numbers<[1], [0], [0], [1], [0, 0, 1, 1], [], []>} : vector<8x512xbf16>, vector<512x128xbf16>, vector<8x128xf32> -> vector<8x128xf32>
    %21 = vector.broadcast %2 : vector<1x128xf32> to vector<8x128xf32>
    %22 = arith.addf %20, %21 : vector<8x128xf32>
    %c0_15 = arith.constant 0 : index
    %c0_16 = arith.constant 0 : index
    %23 = vector.load %arg6[%c0_15, %c0_16] : memref<8x128xf32, #tpu.memory_space<vmem>>, vector<8x128xf32>
    tpu.vector_store %arg6[%c0_15, %c0_16], %22 {strides = array<i32>} : memref<8x128xf32, #tpu.memory_space<vmem>>, vector<8x128xf32>,
    return
  }
  func.func @transform_0(%arg0: i32) -> (i32, i32) {
    %c0_i32 = arith.constant 0 : i32
    %c0_i32_0 = arith.constant 0 : i32
    return %arg0, %c0_i32 : i32, i32
  }
  func.func @transform_1(%arg0: i32) -> (i32, i32) {
    %c0_i32 = arith.constant 0 : i32
    %c0_i32_0 = arith.constant 0 : i32
    %c0_i32_1 = arith.constant 0 : i32
    return %c0_i32, %c0_i32_0 : i32, i32
  }
  func.func @transform_2(%arg0: i32) -> (i32, i32) {
    %c0_i32 = arith.constant 0 : i32
    %c0_i32_0 = arith.constant 0 : i32
    %c0_i32_1 = arith.constant 0 : i32
    return %c0_i32, %c0_i32_0 : i32, i32
  }
  func.func @transform_3(%arg0: i32) -> (i32, i32) {
    %c0_i32 = arith.constant 0 : i32
    %c0_i32_0 = arith.constant 0 : i32
    %c0_i32_1 = arith.constant 0 : i32
    return %c0_i32, %c0_i32_0 : i32, i32
  }
  func.func @transform_4(%arg0: i32) -> (i32, i32) {
    %c0_i32 = arith.constant 0 : i32
    %c0_i32_0 = arith.constant 0 : i32
    %c0_i32_1 = arith.constant 0 : i32
    return %c0_i32, %c0_i32_0 : i32, i32
  }
  func.func @transform_5(%arg0: i32) -> (i32, i32) {
    %c0_i32 = arith.constant 0 : i32
    %c0_i32_0 = arith.constant 0 : i32
    return %arg0, %c0_i32 : i32, i32
  }
}

</mosaic_0001>

<bundles_post_ra>
// kernel: encoder_forward.1
= control target key start
LH: loop header
LB: loop body
LE: loop exit
PB: predicated region body
PF: predicated region fallthrough
CT: control target
= control target key end

     0   :  { %10 = vsyncpa [#allocation3], 0  ;;  %s4125_s0 = inlined_call_operand.hbm [shape: f32[8,784], index: 0, kind: input, shape index: {}]   ;;  %s4126_s1 = inlined_call_operand.hbm [shape: bf16[784,512], index: 1, kind: input, shape index: {}]   ;;  %s4127_s2 = inlined_call_operand.hbm [shape: bf16[512,512], index: 2, kind: input, shape index: {}]   ;;  %s4128_s3 = inlined_call_operand.hbm [shape: bf16[512,128], index: 3, kind: input, shape index: {}]   ;;  %s4129_s4 = inlined_call_operand.hbm [shape: f32[1,1152], index: 4, kind: input, shape index: {}]   ;;  %s4130_s5 = inlined_call_operand.vmem [shape: f32[8,128], index: 5, kind: output, shape index: {}]  }
   0x1   :  { %11 = vsyncpa [#allocation5], 0 }
   0x2   :  { %12 = vsyncpa [#allocation8], 0  ;;  %s3987_s18 = smov [#allocation4]  }
   0x3   :  { %s28_s19 = sshll.u32 %s3987_s18, 4  ;;  %s29_s19 = int_to_ptr.vmem [resolvable:$true] %s28_s19 }
   0x4   :  { %s3889_s20 = scalar_lea.vmem %s29_s19, 25088  ;;  %p3894_p1 = scmp.lt.s32.totalorder %s29_s19, %s29_s19 }
   0x5   :  { %p3890_p0 = scmp.ne.s32.totalorder %s29_s19, %s3889_s20  ;;  %p3895_p2 = scmp.lt.s32.totalorder %s3889_s20, %s3889_s20 }
   0x7   :  { %p3896_p3 = por %p3895_p2, %p3894_p1 }
   0x9   :  { %p3897_p4 = pnand %p3896_p3, %p3890_p0 }
   0xb   :  { %3900 = shalt.err (!%p3897_p4)
}
   0xc   :  { %s3988_s21 = smov 256   ;;  %s3989_s22 = smov 16  }
   0xd   :  { %34 = dma.hbm_to_vmem [thread:$0]  %s4126_s1, 25088, %s29_s19, [#allocation5], %s3988_s21, %s3988_s21, %s3989_s22  }
   0xe   :  { %s3990_s25 = smov [#allocation7]  }
   0xf   :  { %s52_s26 = sshll.u32 %s3990_s25, 4  ;;  %s53_s26 = int_to_ptr.vmem [resolvable:$true] %s52_s26 }
  0x10   :  { %s3909_s27 = scalar_lea.vmem %s53_s26, 4096  ;;  %p3914_p6 = scmp.lt.s32.totalorder %s53_s26, %s53_s26 }
  0x11   :  { %p3910_p5 = scmp.ne.s32.totalorder %s53_s26, %s3909_s27  ;;  %p3915_p7 = scmp.lt.s32.totalorder %s3909_s27, %s3909_s27 }
  0x13   :  { %p3916_p8 = por %p3915_p7, %p3914_p6 }
  0x15   :  { %p3917_p9 = pnand %p3916_p8, %p3910_p5 }
  0x17   :  { %3920 = shalt.err (!%p3917_p9)
}
  0x18   :  { %s3991_s28 = smov 64   ;;  %s3992_s29 = smov 4  }
  0x19   :  { %58 = dma.hbm_to_vmem [thread:$0]  %s4128_s3, 4096, %s53_s26, [#allocation8], %s3991_s28, %s3991_s28, %s3992_s29  }
  0x1a   :  { %s3993_s7 = smov [#allocation2]   ;;  %s3994_s9 = smov [#allocation6]  }
  0x1b   :  { %s19_s8 = sshll.u32 %s3993_s7, 4  ;;  %s40_s1 = sshll.u32 %s3994_s9, 4  ;;  %s20_s8 = int_to_ptr.vmem [resolvable:$true] %s19_s8  ;;  %s41_s1 = int_to_ptr.vmem [resolvable:$true] %s40_s1 }
  0x1c   :  { %s3929_s10 = scalar_lea.vmem %s20_s8, 896  ;;  %p3934_p11 = scmp.lt.s32.totalorder %s20_s8, %s20_s8 }
  0x1d   :  { %p3930_p10 = scmp.ne.s32.totalorder %s20_s8, %s3929_s10  ;;  %p3935_p12 = scmp.lt.s32.totalorder %s3929_s10, %s3929_s10 }
  0x1f   :  { %p3936_p13 = por %p3935_p12, %p3934_p11 }
  0x21   :  { %p3937_p0 = pnand %p3936_p13, %p3930_p10 }
  0x23   :  { %3940 = shalt.err (!%p3937_p0)
}
  0x24   :  { %22 = dma.hbm_to_vmem [thread:$0]  %s4125_s0, 896, %s20_s8, [#allocation3]  }
  0x25   :  { %s3949_s13 = scalar_lea.vmem %s41_s1, 16384  ;;  %p3954_p2 = scmp.lt.s32.totalorder %s41_s1, %s41_s1 }
  0x26   :  { %p3950_p1 = scmp.ne.s32.totalorder %s41_s1, %s3949_s13  ;;  %p3955_p3 = scmp.lt.s32.totalorder %s3949_s13, %s3949_s13 }
  0x28   :  { %p3956_p4 = por %p3955_p3, %p3954_p2 }
  0x2a   :  { %p3957_p5 = pnand %p3956_p4, %p3950_p1 }
  0x2c   :  { %3960 = shalt.err (!%p3957_p5)
}
  0x2d   :  { %46 = dma.hbm_to_vmem [thread:$0]  %s4127_s2, 16384, %s41_s1, [#allocation5], %s3988_s21, %s3988_s21, %s3989_s22  }
  0x2e   :  { %s3995_s15 = smov [#allocation9]  }
  0x2f   :  { %s65_s16 = sshll.u32 %s3995_s15, 4  ;;  %s66_s16 = int_to_ptr.vmem [resolvable:$true] %s65_s16 }
  0x30   :  { %s3969_s17 = scalar_lea.vmem %s66_s16, 144  ;;  %s3973_s0 = scalar_lea.vmem %s66_s16, 160 }
  0x31   :  { %p3970_p6 = scmp.ne.s32.totalorder %s66_s16, %s3969_s17  ;;  %p3974_p7 = scmp.lt.s32.totalorder %s66_s16, %s66_s16 }
  0x32   :  { %p3975_p8 = scmp.lt.s32.totalorder %s3973_s0, %s3969_s17 }
  0x34   :  { %p3976_p9 = por %p3975_p8, %p3974_p7 }
  0x36   :  { %p3977_p10 = pnand %p3976_p9, %p3970_p6 }
  0x38   :  { %3980 = shalt.err (!%p3977_p10)
}
  0x39   :  { %68 = dma.hbm_to_vmem [thread:$0]  %s4129_s4, 144, %s66_s16, [#allocation8]  }
  0x3a   :  { %3981 = dma.done.wait [#allocation3], 896  }
  0x3b   :  { %3982 = vsyncadd [#allocation3], 4294966400 }
  0x3c   :  { %3983 = dma.done.wait [#allocation5], 41472  }
  0x3d   :  { %3984 = vsyncadd [#allocation5], 4294925824 }
  0x3e   :  { %3985 = dma.done.wait [#allocation8], 4240  }
  0x3f   :  { %3986 = vsyncadd [#allocation8], 4294963056  ;;  %v3363_v0 = vld [vmem:[#allocation4 + $0xe4] ss:$16 sps:$4 sm:$0xff]   ;;  %v3367_v2 = vld [vmem:[#allocation4 + $0xe0] ss:$16 sps:$4 sm:$0xff]  }
  0x40   :  { %v3365_v1 = vld [vmem:[#allocation4 + $0x2e4] ss:$16 sps:$4 sm:$0xff]   ;;  %1303 = vmatprep.subr.bf16.mxu0 %v3363_v0  ;;  %v3368_v3 = vld [vmem:[#allocation4 + $0x2e0] ss:$16 sps:$4 sm:$0xff]   ;;  %vm1299_vm0 = vcmask 130048  }
  0x41   :  { %1344 = vmatprep.subr.bf16.mxu1 %v3365_v1  ;;  %v3369_v4 = vld [vmem:[#allocation4 + $0xc4] ss:$16 sps:$4 sm:$0xff]   ;;  %1304 = vmatpush1.bf16.msra.mxu0 %v3367_v2  ;;  %v3373_v6 = vld [vmem:[#allocation4 + $0xc0] ss:$16 sps:$4 sm:$0xff]  }
  0x42   :  { %1345 = vmatpush1.bf16.msra.mxu1 %v3368_v3  ;;  %v3371_v5 = vld [vmem:[#allocation4 + $0x2c4] ss:$16 sps:$4 sm:$0xff]   ;;  %1305 = vmatprep.subr.bf16.mxu0 %v3369_v4  ;;  %v3374_v7 = vld [vmem:[#allocation4 + $0x2c0] ss:$16 sps:$4 sm:$0xff]   ;;  %v88_v4 = vld [vmem:[#allocation2] sm:$0xff] }
  0x43   :  { %1346 = vmatprep.subr.bf16.mxu1 %v3371_v5  ;;  %v3375_v8 = vld [vmem:[#allocation4 + $0xa4] ss:$16 sps:$4 sm:$0xff]   ;;  %v3379_v10 = vld [vmem:[#allocation4 + $0xa0] ss:$16 sps:$4 sm:$0xff]   ;;  %v90_v5 = vld [vmem:[#allocation2 + $0x10] sm:$0xff] }
  0x44   :  { %v3377_v9 = vld [vmem:[#allocation4 + $0x2a4] ss:$16 sps:$4 sm:$0xff]   ;;  %v3380_v11 = vld [vmem:[#allocation4 + $0x2a0] ss:$16 sps:$4 sm:$0xff]  }
  0x45   :  { %1306 = vmatpush1.bf16.msra.mxu0 %v3373_v6  ;;  %v3381_v12 = vld [vmem:[#allocation4 + $0x84] ss:$16 sps:$4 sm:$0xff]   ;;  %v3385_v14 = vld [vmem:[#allocation4 + $0x80] ss:$16 sps:$4 sm:$0xff]  }
  0x46   :  { %1347 = vmatpush1.bf16.msra.mxu1 %v3374_v7  ;;  %1307 = vmatprep.subr.bf16.mxu0 %v3375_v8  ;;  %v3383_v13 = vld [vmem:[#allocation4 + $0x284] ss:$16 sps:$4 sm:$0xff]   ;;  %v3386_v15 = vld [vmem:[#allocation4 + $0x280] ss:$16 sps:$4 sm:$0xff]   ;;  %v4054_v8 = vpack.c.bf16 %v88_v4, %v88_v4  ;;  %v3542_v4 = vld [vmem:[#allocation4 + $0x16c] ss:$16 sps:$4 sm:$0xff]  }
  0x47   :  { %1348 = vmatprep.subr.bf16.mxu1 %v3377_v9  ;;  %v3387_v16 = vld [vmem:[#allocation4 + $0x64] ss:$16 sps:$4 sm:$0xff]   ;;  %v3391_v18 = vld [vmem:[#allocation4 + $0x60] ss:$16 sps:$4 sm:$0xff]   ;;  %v4056_v9 = vpack.c.bf16 %v90_v5, %v90_v5 }
  0x48   :  { %v3389_v17 = vld [vmem:[#allocation4 + $0x264] ss:$16 sps:$4 sm:$0xff]   ;;  %v3392_v19 = vld [vmem:[#allocation4 + $0x260] ss:$16 sps:$4 sm:$0xff]  }
  0x49   :  { %1308 = vmatpush1.bf16.msra.mxu0 %v3379_v10  ;;  %v3393_v20 = vld [vmem:[#allocation4 + $0x44] ss:$16 sps:$4 sm:$0xff]   ;;  %v3397_v22 = vld [vmem:[#allocation4 + $0x40] ss:$16 sps:$4 sm:$0xff]  }
  0x4a   :  { %1349 = vmatpush1.bf16.msra.mxu1 %v3380_v11  ;;  %1309 = vmatprep.subr.bf16.mxu0 %v3381_v12  ;;  %v3395_v21 = vld [vmem:[#allocation4 + $0x244] ss:$16 sps:$4 sm:$0xff]   ;;  %v3398_v23 = vld [vmem:[#allocation4 + $0x240] ss:$16 sps:$4 sm:$0xff]  }
  0x4b   :  { %1350 = vmatprep.subr.bf16.mxu1 %v3383_v13  ;;  %v3399_v24 = vld [vmem:[#allocation4 + $0x24] ss:$16 sps:$4 sm:$0xff]   ;;  %v3403_v26 = vld [vmem:[#allocation4 + $0x20] ss:$16 sps:$4 sm:$0xff]   ;;  %v3470_v13 = vld [vmem:[#allocation4 + $0xec] ss:$16 sps:$4 sm:$0xff]  }
  0x4c   :  { %v3401_v25 = vld [vmem:[#allocation4 + $0x224] ss:$16 sps:$4 sm:$0xff]   ;;  %v3404_v27 = vld [vmem:[#allocation4 + $0x220] ss:$16 sps:$4 sm:$0xff]  }
  0x4d   :  { %1310 = vmatpush1.bf16.msra.mxu0 %v3385_v14  ;;  %v3405_v28 = vld [vmem:[#allocation4 + $0x4] ss:$16 sps:$4 sm:$0xff]   ;;  %v3409_v30 = vld [vmem:[#allocation4] ss:$16 sps:$4 sm:$0xff]  }
  0x4e   :  { %1351 = vmatpush1.bf16.msra.mxu1 %v3386_v15  ;;  %1311 = vmatprep.subr.bf16.mxu0 %v3387_v16  ;;  %v3407_v29 = vld [vmem:[#allocation4 + $0x204] ss:$16 sps:$4 sm:$0xff]   ;;  %v3410_v31 = vld [vmem:[#allocation4 + $0x200] ss:$16 sps:$4 sm:$0xff]   ;;  %v94_v15 = vld [vmem:[#allocation2 + $0x30] sm:$0xff]  ;;  %v3996_v16 = vmov 0  }
  0x4f   :  { %1352 = vmatprep.subr.bf16.mxu1 %v3389_v17  ;;  %v3411_v32 = vld [vmem:[#allocation4 + $0x1e4] ss:$16 sps:$4 sm:$0xff]   ;;  %v3415_v34 = vld [vmem:[#allocation4 + $0x1e0] ss:$16 sps:$4 sm:$0xff]  }
  0x50   :  { %v3413_v33 = vld [vmem:[#allocation4 + $0x3e4] ss:$16 sps:$4 sm:$0xff]   ;;  %v3416_v35 = vld [vmem:[#allocation4 + $0x3e0] ss:$16 sps:$4 sm:$0xff]  }
  0x51   :  { %1312 = vmatpush1.bf16.msra.mxu0 %v3391_v18  ;;  %v3417_v36 = vld [vmem:[#allocation4 + $0x1c4] ss:$16 sps:$4 sm:$0xff]   ;;  %v3421_v38 = vld [vmem:[#allocation4 + $0x1c0] ss:$16 sps:$4 sm:$0xff]   ;;  %v3468_v18 = vld [vmem:[#allocation4 + $0xe8] ss:$16 sps:$4 sm:$0xff]  }
  0x52   :  { %1353 = vmatpush1.bf16.msra.mxu1 %v3392_v19  ;;  %1313 = vmatprep.subr.bf16.mxu0 %v3393_v20  ;;  %v3419_v37 = vld [vmem:[#allocation4 + $0x3c4] ss:$16 sps:$4 sm:$0xff]   ;;  %v3422_v39 = vld [vmem:[#allocation4 + $0x3c0] ss:$16 sps:$4 sm:$0xff]   ;;  %v4061_v19 = vpack.c.bf16 %v94_v15, %v94_v15  ;;  %v92_v15 = vld [vmem:[#allocation2 + $0x20] sm:$0xff] }
  0x53   :  { %1354 = vmatprep.subr.bf16.mxu1 %v3395_v21  ;;  %v3423_v40 = vld [vmem:[#allocation4 + $0x1a4] ss:$16 sps:$4 sm:$0xff]   ;;  %v3427_v42 = vld [vmem:[#allocation4 + $0x1a0] ss:$16 sps:$4 sm:$0xff]   ;;  %v3476_v21 = vld [vmem:[#allocation4 + $0xcc] ss:$16 sps:$4 sm:$0xff]  }
  0x54   :  { %v3425_v41 = vld [vmem:[#allocation4 + $0x3a4] ss:$16 sps:$4 sm:$0xff]   ;;  %v3428_v43 = vld [vmem:[#allocation4 + $0x3a0] ss:$16 sps:$4 sm:$0xff]  }
  0x55   :  { %1314 = vmatpush1.bf16.msra.mxu0 %v3397_v22  ;;  %v3429_v44 = vld [vmem:[#allocation4 + $0x184] ss:$16 sps:$4 sm:$0xff]   ;;  %v3433_v47 = vld [vmem:[#allocation4 + $0x180] ss:$16 sps:$4 sm:$0xff]  }
  0x56   :  { %1355 = vmatpush1.bf16.msra.mxu1 %v3398_v23  ;;  %1315 = vmatprep.subr.bf16.mxu0 %v3399_v24  ;;  %v3431_v45 = vld [vmem:[#allocation4 + $0x384] ss:$16 sps:$4 sm:$0xff]   ;;  %v3434_v48 = vld [vmem:[#allocation4 + $0x380] ss:$16 sps:$4 sm:$0xff]   ;;  %v3474_v23 = vld [vmem:[#allocation4 + $0xc8] ss:$16 sps:$4 sm:$0xff]  }
  0x57   :  { %1356 = vmatprep.subr.bf16.mxu1 %v3401_v25  ;;  %v89_v46 = vld [vmem:[#allocation2 + $0x8] sm:$0xff]  ;;  %v91_v50 = vld [vmem:[#allocation2 + $0x18] sm:$0xff]  ;;  %v3482_v25 = vld [vmem:[#allocation4 + $0xac] ss:$16 sps:$4 sm:$0xff]  }
  0x58   :  { %v4048_v49 = vpack.c.bf16 %v89_v46, %v89_v46  ;;  %v3435_v51 = vld [vmem:[#allocation4 + $0x164] ss:$16 sps:$4 sm:$0xff]   ;;  %v4050_v52 = vpack.c.bf16 %v91_v50, %v91_v50  ;;  %v3439_v54 = vld [vmem:[#allocation4 + $0x160] ss:$16 sps:$4 sm:$0xff]  }
  0x59   :  { %1316 = vmatpush1.bf16.msra.mxu0 %v3403_v26  ;;  %v3437_v53 = vld [vmem:[#allocation4 + $0x364] ss:$16 sps:$4 sm:$0xff]   ;;  %v3440_v55 = vld [vmem:[#allocation4 + $0x360] ss:$16 sps:$4 sm:$0xff]  }
  0x5a   :  { %1357 = vmatpush1.bf16.msra.mxu1 %v3404_v27  ;;  %1317 = vmatprep.subr.bf16.mxu0 %v3405_v28  ;;  %v3441_v56 = vld [vmem:[#allocation4 + $0x144] ss:$16 sps:$4 sm:$0xff]   ;;  %v3445_v58 = vld [vmem:[#allocation4 + $0x140] ss:$16 sps:$4 sm:$0xff]   ;;  %v3480_v27 = vld [vmem:[#allocation4 + $0xa8] ss:$16 sps:$4 sm:$0xff]  }
  0x5b   :  { %1358 = vmatprep.subr.bf16.mxu1 %v3407_v29  ;;  %1335 = vmatprep.mubr.bf16.mxu0 %v4048_v49  ;;  %v3443_v57 = vld [vmem:[#allocation4 + $0x344] ss:$16 sps:$4 sm:$0xff]   ;;  %v3446_v59 = vld [vmem:[#allocation4 + $0x340] ss:$16 sps:$4 sm:$0xff]   ;;  %v3488_v29 = vld [vmem:[#allocation4 + $0x8c] ss:$16 sps:$4 sm:$0xff]  }
  0x5c   :  { %1376 = vmatprep.mubr.bf16.mxu1 %v4050_v52  ;;  %v3447_v60 = vld [vmem:[#allocation4 + $0x124] ss:$16 sps:$4 sm:$0xff]   ;;  %v3451_v62 = vld [vmem:[#allocation4 + $0x120] ss:$16 sps:$4 sm:$0xff]  }
  0x5d   :  { %1318 = vmatpush1.bf16.msra.mxu0 %v3409_v30  ;;  %v3449_v61 = vld [vmem:[#allocation4 + $0x324] ss:$16 sps:$4 sm:$0xff]   ;;  %v3452_v63 = vld [vmem:[#allocation4 + $0x320] ss:$16 sps:$4 sm:$0xff]  }
  0x5e   :  { %1359 = vmatpush1.bf16.msra.mxu1 %v3410_v31  ;;  %1319 = vmatprep.subr.bf16.mxu0 %v3411_v32  ;;  %v3453_v0 = vld [vmem:[#allocation4 + $0x104] ss:$16 sps:$4 sm:$0xff]   ;;  %v3457_v2 = vld [vmem:[#allocation4 + $0x100] ss:$16 sps:$4 sm:$0xff]   ;;  %v3486_v31 = vld [vmem:[#allocation4 + $0x88] ss:$16 sps:$4 sm:$0xff]  }
  0x5f   :  { %1360 = vmatprep.subr.bf16.mxu1 %v3413_v33  ;;  %v3455_v1 = vld [vmem:[#allocation4 + $0x304] ss:$16 sps:$4 sm:$0xff]   ;;  %v3458_v3 = vld [vmem:[#allocation4 + $0x300] ss:$16 sps:$4 sm:$0xff]   ;;  %v3494_v33 = vld [vmem:[#allocation4 + $0x6c] ss:$16 sps:$4 sm:$0xff]  }
  0x60   :  { %v3461_v6 = vld [vmem:[#allocation4 + $0x4e4] ss:$16 sps:$4 sm:$0xff]   ;;  %v3459_v10 = vld [vmem:[#allocation4 + $0x4e0] ss:$16 sps:$4 sm:$0xff]  }
  0x61   :  { %1320 = vmatpush2.bf16.msra.mxu0 %v3415_v34  ;;  %v3464_v7 = vld [vmem:[#allocation4 + $0x604] ss:$16 sps:$4 sm:$0xff]   ;;  %v3462_v11 = vld [vmem:[#allocation4 + $0x600] ss:$16 sps:$4 sm:$0xff]  }
  0x62   :  { %1361 = vmatpush2.bf16.msra.mxu1 %v3416_v35  ;;  %1321 = vmatprep.subr.bf16.mxu0 %v3417_v36  ;;  %v3467_v12 = vld [vmem:[#allocation4 + $0x4c4] ss:$16 sps:$4 sm:$0xff]   ;;  %v3465_v14 = vld [vmem:[#allocation4 + $0x4c0] ss:$16 sps:$4 sm:$0xff]  }
  0x63   :  { %1362 = vmatprep.subr.bf16.mxu1 %v3419_v37  ;;  %v3473_v17 = vld [vmem:[#allocation4 + $0x4a4] ss:$16 sps:$4 sm:$0xff]   ;;  %v3471_v20 = vld [vmem:[#allocation4 + $0x4a0] ss:$16 sps:$4 sm:$0xff]   ;;  %v3492_v37 = vld [vmem:[#allocation4 + $0x68] ss:$16 sps:$4 sm:$0xff]  }
  0x64   :  { %v3479_v22 = vld [vmem:[#allocation4 + $0x484] ss:$16 sps:$4 sm:$0xff]   ;;  %v3477_v24 = vld [vmem:[#allocation4 + $0x480] ss:$16 sps:$4 sm:$0xff]  }
  0x65   :  { %1322 = vmatpush2.bf16.msra.mxu0 %v3421_v38  ;;  %v3485_v26 = vld [vmem:[#allocation4 + $0x464] ss:$16 sps:$4 sm:$0xff]   ;;  %v3483_v28 = vld [vmem:[#allocation4 + $0x460] ss:$16 sps:$4 sm:$0xff]  }
  0x66   :  { %1363 = vmatpush2.bf16.msra.mxu1 %v3422_v39  ;;  %1323 = vmatprep.subr.bf16.mxu0 %v3423_v40  ;;  %v3491_v30 = vld [vmem:[#allocation4 + $0x444] ss:$16 sps:$4 sm:$0xff]   ;;  %v3489_v32 = vld [vmem:[#allocation4 + $0x440] ss:$16 sps:$4 sm:$0xff]   ;;  %v3500_v39 = vld [vmem:[#allocation4 + $0x4c] ss:$16 sps:$4 sm:$0xff]  }
  0x67   :  { %1364 = vmatprep.subr.bf16.mxu1 %v3425_v41  ;;  %v3497_v34 = vld [vmem:[#allocation4 + $0x424] ss:$16 sps:$4 sm:$0xff]   ;;  %v3495_v38 = vld [vmem:[#allocation4 + $0x420] ss:$16 sps:$4 sm:$0xff]   ;;  %v3498_v41 = vld [vmem:[#allocation4 + $0x48] ss:$16 sps:$4 sm:$0xff]  }
  0x68   :  { %v93_v35 = vld [vmem:[#allocation2 + $0x28] sm:$0xff] }
  0x69   :  { %1324 = vmatpush2.bf16.msra.mxu0 %v3427_v42  ;;  %v4066_v36 = vpack.c.bf16 %v93_v35, %v93_v35  ;;  %v3503_v40 = vld [vmem:[#allocation4 + $0x404] ss:$16 sps:$4 sm:$0xff]   ;;  %v3501_v42 = vld [vmem:[#allocation4 + $0x400] ss:$16 sps:$4 sm:$0xff]   ;;  %v3581_v35 = vld [vmem:[#allocation4 + $0x26c] ss:$16 sps:$4 sm:$0xff]  }
  0x6a   :  { %1365 = vmatpush2.bf16.msra.mxu1 %v3428_v43  ;;  %1325 = vmatprep.subr.bf16.mxu0 %v3429_v44  ;;  %v3506_v43 = vld [vmem:[#allocation4 + $0x2c] ss:$16 sps:$4 sm:$0xff]   ;;  %v3509_v44 = vld [vmem:[#allocation4 + $0x5e4] ss:$16 sps:$4 sm:$0xff]   ;;  %v3507_v46 = vld [vmem:[#allocation4 + $0x5e0] ss:$16 sps:$4 sm:$0xff]  }
  0x6b   :  { %1366 = vmatprep.subr.bf16.mxu1 %v3431_v45  ;;  %v3504_v45 = vld [vmem:[#allocation4 + $0x28] ss:$16 sps:$4 sm:$0xff]   ;;  %v3513_v50 = vld [vmem:[#allocation4 + $0x5c0] ss:$16 sps:$4 sm:$0xff]   ;;  %v3545_v5 = vld [vmem:[#allocation4 + $0x524] ss:$16 sps:$4 sm:$0xff]  }
  0x6d   :  { %1326 = vmatpush2.bf16.msra.mxu0 %v3433_v47  ;;  %v3512_v47 = vld [vmem:[#allocation4 + $0xc] ss:$16 sps:$4 sm:$0xff]  }
  0x6e   :  { %1367 = vmatpush2.bf16.msra.mxu1 %v3434_v48  ;;  %1327 = vmatprep.subr.bf16.mxu0 %v3435_v51  ;;  %v3515_v48 = vld [vmem:[#allocation4 + $0x5c4] ss:$16 sps:$4 sm:$0xff]   ;;  %v3518_v51 = vld [vmem:[#allocation4 + $0x1ec] ss:$16 sps:$4 sm:$0xff]  }
  0x6f   :  { %1368 = vmatprep.subr.bf16.mxu1 %v3437_v53  ;;  %v3521_v53 = vld [vmem:[#allocation4 + $0x5a4] ss:$16 sps:$4 sm:$0xff]  }
  0x71   :  { %1328 = vmatpush2.bf16.msra.mxu0 %v3439_v54  ;;  %v3516_v54 = vld [vmem:[#allocation4 + $0x1e8] ss:$16 sps:$4 sm:$0xff]  }
  0x72   :  { %1369 = vmatpush2.bf16.msra.mxu1 %v3440_v55  ;;  %1329 = vmatprep.subr.bf16.mxu0 %v3441_v56  ;;  %v3519_v55 = vld [vmem:[#allocation4 + $0x5a0] ss:$16 sps:$4 sm:$0xff]   ;;  %v3524_v56 = vld [vmem:[#allocation4 + $0x1cc] ss:$16 sps:$4 sm:$0xff]  }
  0x73   :  { %1370 = vmatprep.subr.bf16.mxu1 %v3443_v57  ;;  %v3527_v57 = vld [vmem:[#allocation4 + $0x584] ss:$16 sps:$4 sm:$0xff]  }
  0x75   :  { %1330 = vmatpush2.bf16.msra.mxu0 %v3445_v58  ;;  %v3522_v58 = vld [vmem:[#allocation4 + $0x1c8] ss:$16 sps:$4 sm:$0xff]  }
  0x76   :  { %1371 = vmatpush2.bf16.msra.mxu1 %v3446_v59  ;;  %1331 = vmatprep.subr.bf16.mxu0 %v3447_v60  ;;  %v3525_v59 = vld [vmem:[#allocation4 + $0x580] ss:$16 sps:$4 sm:$0xff]   ;;  %v3530_v60 = vld [vmem:[#allocation4 + $0x1ac] ss:$16 sps:$4 sm:$0xff]  }
  0x77   :  { %1372 = vmatprep.subr.bf16.mxu1 %v3449_v61  ;;  %v3533_v61 = vld [vmem:[#allocation4 + $0x564] ss:$16 sps:$4 sm:$0xff]  }
  0x79   :  { %1332 = vmatpush2.bf16.msra.mxu0 %v3451_v62  ;;  %v3528_v62 = vld [vmem:[#allocation4 + $0x1a8] ss:$16 sps:$4 sm:$0xff]  }
  0x7a   :  { %1373 = vmatpush2.bf16.msra.mxu1 %v3452_v63  ;;  %1333 = vmatprep.subr.bf16.mxu0 %v3453_v0  ;;  %v3531_v63 = vld [vmem:[#allocation4 + $0x560] ss:$16 sps:$4 sm:$0xff]   ;;  %v3536_v0 = vld [vmem:[#allocation4 + $0x18c] ss:$16 sps:$4 sm:$0xff]  }
  0x7b   :  { %1374 = vmatprep.subr.bf16.mxu1 %v3455_v1  ;;  %v3539_v1 = vld [vmem:[#allocation4 + $0x544] ss:$16 sps:$4 sm:$0xff]  }
  0x7d   :  { %1334 = vmatpush2.bf16.msra.mxu0 %v3457_v2  ;;  %v3534_v2 = vld [vmem:[#allocation4 + $0x188] ss:$16 sps:$4 sm:$0xff]  }
  0x7e   :  { %1375 = vmatpush2.bf16.msra.mxu1 %v3458_v3  ;;  %1385 = vmatprep.subr.bf16.mxu0 %v3461_v6  ;;  %v3537_v3 = vld [vmem:[#allocation4 + $0x540] ss:$16 sps:$4 sm:$0xff]   ;;  %v3540_v6 = vld [vmem:[#allocation4 + $0x168] ss:$16 sps:$4 sm:$0xff]  }
  0x7f   :  { %1440 = vmatprep.subr.bf16.mxu1 %v3464_v7  ;;  %v3543_v7 = vld [vmem:[#allocation4 + $0x520] ss:$16 sps:$4 sm:$0xff]  }
  0x80   :  { %1336 = vmatmul.mubr.bf16.vlgmr.msra.gmra.mxu0 %v4054_v8 }
  0x81   :  { %1377 = vmatmul.mubr.bf16.vlgmr.msra.gmra.mxu1 %v4056_v9  ;;  %1386 = vmatpush1.bf16.msra.mxu0 %v3459_v10  ;;  %v3548_v10 = vld [vmem:[#allocation4 + $0x14c] ss:$16 sps:$4 sm:$0xff]  }
  0x82   :  { %1441 = vmatpush1.bf16.msra.mxu1 %v3462_v11  ;;  %1387 = vmatprep.subr.bf16.mxu0 %v3467_v12  ;;  %v3551_v11 = vld [vmem:[#allocation4 + $0x504] ss:$16 sps:$4 sm:$0xff]   ;;  %v3546_v12 = vld [vmem:[#allocation4 + $0x148] ss:$16 sps:$4 sm:$0xff]  }
  0x83   :  { %1458 = vmatprep.mubr.bf16.mxu1 %v3996_v16  ;;  %1467 = vmatprep.subr.bf16.mxu1 %v3470_v13  ;;  %v3549_v13 = vld [vmem:[#allocation4 + $0x500] ss:$16 sps:$4 sm:$0xff]  }
  0x84   :  { %1417 = vmatprep.mubr.bf16.mxu0 %v4066_v36 }
  0x85   :  { %1388 = vmatpush1.bf16.msra.mxu0 %v3465_v14  ;;  %v3554_v14 = vld [vmem:[#allocation4 + $0x12c] ss:$16 sps:$4 sm:$0xff]  }
  0x86   :  { %1389 = vmatprep.subr.bf16.mxu0 %v3473_v17  ;;  %v3557_v17 = vld [vmem:[#allocation4 + $0x2ec] ss:$16 sps:$4 sm:$0xff]  }
  0x89   :  { %3146 = vmatmul.mubr.msk.bf16.vlgmr.msra.gmra.mxu1 %vm1299_vm0, %v4061_v19  ;;  %1390 = vmatpush1.bf16.msra.mxu0 %v3471_v20  ;;  %v4069_v20 = vpack.c.bf16 %v92_v15, %v92_v15  ;;  %v3644_v15 = vld [vmem:[#allocation4 + $0x54c] ss:$16 sps:$4 sm:$0xff]  }
  0x8a   :  { %1468 = vmatpush1.bf16.msra.mxu1 %v3468_v18  ;;  %1391 = vmatprep.subr.bf16.mxu0 %v3479_v22  ;;  %v3552_v18 = vld [vmem:[#allocation4 + $0x128] ss:$16 sps:$4 sm:$0xff]   ;;  %v3560_v22 = vld [vmem:[#allocation4 + $0x10c] ss:$16 sps:$4 sm:$0xff]  }
  0x8b   :  { %1469 = vmatprep.subr.bf16.mxu1 %v3476_v21  ;;  %1499 = vmatprep.mubr.bf16.mxu1 %v4048_v49  ;;  %v3510_v49 = vld [vmem:[#allocation4 + $0x8] ss:$16 sps:$4 sm:$0xff]  }
  0x8c   :  { %v3555_v21 = vld [vmem:[#allocation4 + $0x2e8] ss:$16 sps:$4 sm:$0xff]  }
  0x8d   :  { %1392 = vmatpush1.bf16.msra.mxu0 %v3477_v24  ;;  %v3558_v24 = vld [vmem:[#allocation4 + $0x108] ss:$16 sps:$4 sm:$0xff]  }
  0x8e   :  { %1470 = vmatpush1.bf16.msra.mxu1 %v3474_v23  ;;  %1393 = vmatprep.subr.bf16.mxu0 %v3485_v26  ;;  %v3563_v23 = vld [vmem:[#allocation4 + $0x2cc] ss:$16 sps:$4 sm:$0xff]  }
  0x8f   :  { %1471 = vmatprep.subr.bf16.mxu1 %v3482_v25  ;;  %v3561_v25 = vld [vmem:[#allocation4 + $0x2c8] ss:$16 sps:$4 sm:$0xff]   ;;  %v3566_v26 = vld [vmem:[#allocation4 + $0x4ec] ss:$16 sps:$4 sm:$0xff]  }
  0x91   :  { %1394 = vmatpush1.bf16.msra.mxu0 %v3483_v28  ;;  %v3564_v28 = vld [vmem:[#allocation4 + $0x4e8] ss:$16 sps:$4 sm:$0xff]  }
  0x92   :  { %1472 = vmatpush1.bf16.msra.mxu1 %v3480_v27  ;;  %1395 = vmatprep.subr.bf16.mxu0 %v3491_v30  ;;  %v3569_v27 = vld [vmem:[#allocation4 + $0x2ac] ss:$16 sps:$4 sm:$0xff]  }
  0x93   :  { %1473 = vmatprep.subr.bf16.mxu1 %v3488_v29  ;;  %v3567_v29 = vld [vmem:[#allocation4 + $0x2a8] ss:$16 sps:$4 sm:$0xff]   ;;  %v3572_v30 = vld [vmem:[#allocation4 + $0x4cc] ss:$16 sps:$4 sm:$0xff]  }
  0x95   :  { %1396 = vmatpush1.bf16.msra.mxu0 %v3489_v32  ;;  %v3570_v32 = vld [vmem:[#allocation4 + $0x4c8] ss:$16 sps:$4 sm:$0xff]  }
  0x96   :  { %1474 = vmatpush1.bf16.msra.mxu1 %v3486_v31  ;;  %1397 = vmatprep.subr.bf16.mxu0 %v3497_v34  ;;  %v3575_v31 = vld [vmem:[#allocation4 + $0x28c] ss:$16 sps:$4 sm:$0xff]  }
  0x97   :  { %1475 = vmatprep.subr.bf16.mxu1 %v3494_v33  ;;  %v3573_v33 = vld [vmem:[#allocation4 + $0x288] ss:$16 sps:$4 sm:$0xff]   ;;  %v3578_v34 = vld [vmem:[#allocation4 + $0x4ac] ss:$16 sps:$4 sm:$0xff]  }
  0x99   :  { %1398 = vmatpush1.bf16.msra.mxu0 %v3495_v38  ;;  %v3579_v38 = vld [vmem:[#allocation4 + $0x268] ss:$16 sps:$4 sm:$0xff]  }
  0x9a   :  { %1476 = vmatpush1.bf16.msra.mxu1 %v3492_v37  ;;  %1399 = vmatprep.subr.bf16.mxu0 %v3503_v40  ;;  %v3576_v37 = vld [vmem:[#allocation4 + $0x4a8] ss:$16 sps:$4 sm:$0xff]  }
  0x9b   :  { %1477 = vmatprep.subr.bf16.mxu1 %v3500_v39  ;;  %v3587_v39 = vld [vmem:[#allocation4 + $0x24c] ss:$16 sps:$4 sm:$0xff]   ;;  %v3582_v40 = vld [vmem:[#allocation4 + $0x488] ss:$16 sps:$4 sm:$0xff]  }
  0x9d   :  { %1400 = vmatpush1.bf16.msra.mxu0 %v3501_v42  ;;  %v3593_v42 = vld [vmem:[#allocation4 + $0x22c] ss:$16 sps:$4 sm:$0xff]  }
  0x9e   :  { %1478 = vmatpush1.bf16.msra.mxu1 %v3498_v41  ;;  %1401 = vmatprep.subr.bf16.mxu0 %v3509_v44  ;;  %v3590_v41 = vld [vmem:[#allocation4 + $0x46c] ss:$16 sps:$4 sm:$0xff]   ;;  %v3591_v44 = vld [vmem:[#allocation4 + $0x228] ss:$16 sps:$4 sm:$0xff]  }
  0x9f   :  { %1479 = vmatprep.subr.bf16.mxu1 %v3506_v43  ;;  %v3588_v43 = vld [vmem:[#allocation4 + $0x468] ss:$16 sps:$4 sm:$0xff]  }
  0xa1   :  { %1402 = vmatpush2.bf16.msra.mxu0 %v3507_v46  ;;  %v3594_v46 = vld [vmem:[#allocation4 + $0x448] ss:$16 sps:$4 sm:$0xff]  }
  0xa2   :  { %1480 = vmatpush1.bf16.msra.mxu1 %v3504_v45  ;;  %1403 = vmatprep.subr.bf16.mxu0 %v3515_v48  ;;  %v3599_v45 = vld [vmem:[#allocation4 + $0x20c] ss:$16 sps:$4 sm:$0xff]  }
  0xa3   :  { %1481 = vmatprep.subr.bf16.mxu1 %v3512_v47  ;;  %v3597_v47 = vld [vmem:[#allocation4 + $0x208] ss:$16 sps:$4 sm:$0xff]   ;;  %v3602_v48 = vld [vmem:[#allocation4 + $0x42c] ss:$16 sps:$4 sm:$0xff]  }
  0xa5   :  { %1404 = vmatpush2.bf16.msra.mxu0 %v3513_v50  ;;  %v3600_v50 = vld [vmem:[#allocation4 + $0x428] ss:$16 sps:$4 sm:$0xff]  }
  0xa6   :  { %1482 = vmatpush1.bf16.msra.mxu1 %v3510_v49  ;;  %1405 = vmatprep.subr.bf16.mxu0 %v3521_v53  ;;  %v3605_v49 = vld [vmem:[#allocation4 + $0x3ec] ss:$16 sps:$4 sm:$0xff]  }
  0xa7   :  { %1483 = vmatprep.subr.bf16.mxu1 %v3518_v51  ;;  %v3603_v51 = vld [vmem:[#allocation4 + $0x3e8] ss:$16 sps:$4 sm:$0xff]   ;;  %v3608_v53 = vld [vmem:[#allocation4 + $0x40c] ss:$16 sps:$4 sm:$0xff]  }
  0xa9   :  { %1406 = vmatpush2.bf16.msra.mxu0 %v3519_v55  ;;  %v3606_v55 = vld [vmem:[#allocation4 + $0x408] ss:$16 sps:$4 sm:$0xff]  }
  0xaa   :  { %1484 = vmatpush2.bf16.msra.mxu1 %v3516_v54  ;;  %1407 = vmatprep.subr.bf16.mxu0 %v3527_v57  ;;  %v3611_v54 = vld [vmem:[#allocation4 + $0x3cc] ss:$16 sps:$4 sm:$0xff]  }
  0xab   :  { %1485 = vmatprep.subr.bf16.mxu1 %v3524_v56  ;;  %v3609_v56 = vld [vmem:[#allocation4 + $0x3c8] ss:$16 sps:$4 sm:$0xff]   ;;  %v3614_v57 = vld [vmem:[#allocation4 + $0x5ec] ss:$16 sps:$4 sm:$0xff]  }
  0xad   :  { %1408 = vmatpush2.bf16.msra.mxu0 %v3525_v59  ;;  %v3612_v59 = vld [vmem:[#allocation4 + $0x5e8] ss:$16 sps:$4 sm:$0xff]  }
  0xae   :  { %1486 = vmatpush2.bf16.msra.mxu1 %v3522_v58  ;;  %1409 = vmatprep.subr.bf16.mxu0 %v3533_v61  ;;  %v3617_v58 = vld [vmem:[#allocation4 + $0x3ac] ss:$16 sps:$4 sm:$0xff]  }
  0xaf   :  { %1487 = vmatprep.subr.bf16.mxu1 %v3530_v60  ;;  %v3615_v60 = vld [vmem:[#allocation4 + $0x3a8] ss:$16 sps:$4 sm:$0xff]   ;;  %v3620_v61 = vld [vmem:[#allocation4 + $0x5cc] ss:$16 sps:$4 sm:$0xff]  }
  0xb1   :  { %1410 = vmatpush2.bf16.msra.mxu0 %v3531_v63  ;;  %v3618_v63 = vld [vmem:[#allocation4 + $0x5c8] ss:$16 sps:$4 sm:$0xff]  }
  0xb2   :  { %1488 = vmatpush2.bf16.msra.mxu1 %v3528_v62  ;;  %1411 = vmatprep.subr.bf16.mxu0 %v3539_v1  ;;  %v3623_v62 = vld [vmem:[#allocation4 + $0x38c] ss:$16 sps:$4 sm:$0xff]  }
  0xb3   :  { %1489 = vmatprep.subr.bf16.mxu1 %v3536_v0  ;;  %v3621_v0 = vld [vmem:[#allocation4 + $0x388] ss:$16 sps:$4 sm:$0xff]   ;;  %v3626_v1 = vld [vmem:[#allocation4 + $0x5ac] ss:$16 sps:$4 sm:$0xff]  }
  0xb5   :  { %1412 = vmatpush2.bf16.msra.mxu0 %v3537_v3  ;;  %v3624_v3 = vld [vmem:[#allocation4 + $0x5a8] ss:$16 sps:$4 sm:$0xff]  }
  0xb6   :  { %1490 = vmatpush2.bf16.msra.mxu1 %v3534_v2  ;;  %1413 = vmatprep.subr.bf16.mxu0 %v3545_v5  ;;  %v3629_v2 = vld [vmem:[#allocation4 + $0x36c] ss:$16 sps:$4 sm:$0xff]  }
  0xb7   :  { %1491 = vmatprep.subr.bf16.mxu1 %v3542_v4  ;;  %v3627_v4 = vld [vmem:[#allocation4 + $0x368] ss:$16 sps:$4 sm:$0xff]   ;;  %v3632_v5 = vld [vmem:[#allocation4 + $0x58c] ss:$16 sps:$4 sm:$0xff]  }
  0xb9   :  { %1414 = vmatpush2.bf16.msra.mxu0 %v3543_v7  ;;  %v3630_v7 = vld [vmem:[#allocation4 + $0x588] ss:$16 sps:$4 sm:$0xff]  }
  0xba   :  { %1492 = vmatpush2.bf16.msra.mxu1 %v3540_v6  ;;  %1415 = vmatprep.subr.bf16.mxu0 %v3551_v11  ;;  %v3635_v6 = vld [vmem:[#allocation4 + $0x34c] ss:$16 sps:$4 sm:$0xff]  }
  0xbb   :  { %1493 = vmatprep.subr.bf16.mxu1 %v3548_v10  ;;  %v3633_v10 = vld [vmem:[#allocation4 + $0x348] ss:$16 sps:$4 sm:$0xff]   ;;  %v3638_v11 = vld [vmem:[#allocation4 + $0x56c] ss:$16 sps:$4 sm:$0xff]  }
  0xbd   :  { %1416 = vmatpush2.bf16.msra.mxu0 %v3549_v13  ;;  %v3636_v13 = vld [vmem:[#allocation4 + $0x568] ss:$16 sps:$4 sm:$0xff]  }
  0xbe   :  { %1494 = vmatpush2.bf16.msra.mxu1 %v3546_v12  ;;  %1508 = vmatprep.subr.bf16.mxu0 %v3557_v17  ;;  %v3641_v12 = vld [vmem:[#allocation4 + $0x32c] ss:$16 sps:$4 sm:$0xff]  }
  0xbf   :  { %1495 = vmatprep.subr.bf16.mxu1 %v3554_v14  ;;  %v3639_v14 = vld [vmem:[#allocation4 + $0x328] ss:$16 sps:$4 sm:$0xff]   ;;  %v3647_v17 = vld [vmem:[#allocation4 + $0x30c] ss:$16 sps:$4 sm:$0xff]  }
  0xc0   :  { %1418 = vmatmul.mubr.bf16.vlgmr.msra.gmra.mxu0 %v4069_v20 }
  0xc1   :  { %1509 = vmatpush1.bf16.msra.mxu0 %v3555_v21  ;;  %1540 = vmatprep.mubr.bf16.mxu0 %v4050_v52  ;;  %v3584_v52 = vld [vmem:[#allocation4 + $0x48c] ss:$16 sps:$4 sm:$0xff]   ;;  %v3645_v21 = vld [vmem:[#allocation4 + $0x308] ss:$16 sps:$4 sm:$0xff]  }
  0xc2   :  { %1496 = vmatpush2.bf16.msra.mxu1 %v3552_v18  ;;  %1510 = vmatprep.subr.bf16.mxu0 %v3563_v23  ;;  %v3642_v18 = vld [vmem:[#allocation4 + $0x548] ss:$16 sps:$4 sm:$0xff]   ;;  %v3653_v23 = vld [vmem:[#allocation4 + $0x60c] ss:$16 sps:$4 sm:$0xff]  }
  0xc3   :  { %1497 = vmatprep.subr.bf16.mxu1 %v3560_v22  ;;  %v3650_v22 = vld [vmem:[#allocation4 + $0x52c] ss:$16 sps:$4 sm:$0xff]  }
  0xc5   :  { %1511 = vmatpush1.bf16.msra.mxu0 %v3561_v25  ;;  %v3651_v25 = vld [vmem:[#allocation4 + $0x608] ss:$16 sps:$4 sm:$0xff]  }
  0xc6   :  { %1498 = vmatpush2.bf16.msra.mxu1 %v3558_v24  ;;  %1512 = vmatprep.subr.bf16.mxu0 %v3569_v27  ;;  %v3648_v24 = vld [vmem:[#allocation4 + $0x528] ss:$16 sps:$4 sm:$0xff]   ;;  %v3659_v27 = vld [vmem:[#allocation6 + $0xe4] ss:$16 sps:$4 sm:$0xff]  }
  0xc7   :  { %1549 = vmatprep.subr.bf16.mxu1 %v3566_v26  ;;  %v3656_v26 = vld [vmem:[#allocation4 + $0x50c] ss:$16 sps:$4 sm:$0xff]  }
  0xc9   :  { %1500 = vmatmul.mubr.bf16.vlgmr.msra.gmra.mxu1 %v4054_v8  ;;  %1513 = vmatpush1.bf16.msra.mxu0 %v3567_v29  ;;  %v3585_v8 = vld [vmem:[#allocation4 + $0x248] ss:$16 sps:$4 sm:$0xff]   ;;  %v3657_v29 = vld [vmem:[#allocation6 + $0xe0] ss:$16 sps:$4 sm:$0xff]  }
  0xca   :  { %1550 = vmatpush1.bf16.msra.mxu1 %v3564_v28  ;;  %1514 = vmatprep.subr.bf16.mxu0 %v3575_v31  ;;  %v3654_v28 = vld [vmem:[#allocation4 + $0x508] ss:$16 sps:$4 sm:$0xff]   ;;  %v3660_v31 = vld [vmem:[#allocation6 + $0xc0] ss:$16 sps:$4 sm:$0xff]  }
  0xcb   :  { %1551 = vmatprep.subr.bf16.mxu1 %v3572_v30  ;;  %1581 = vmatprep.mubr.bf16.mxu1 %v4066_v36  ;;  %v3596_v36 = vld [vmem:[#allocation4 + $0x44c] ss:$16 sps:$4 sm:$0xff]   ;;  %v3662_v30 = vld [vmem:[#allocation6 + $0xc4] ss:$16 sps:$4 sm:$0xff]  }
  0xcd   :  { %1515 = vmatpush1.bf16.msra.mxu0 %v3573_v33  ;;  %v3663_v33 = vld [vmem:[#allocation6 + $0xa0] ss:$16 sps:$4 sm:$0xff]  }
  0xce   :  { %1552 = vmatpush1.bf16.msra.mxu1 %v3570_v32  ;;  %1516 = vmatprep.subr.bf16.mxu0 %v3581_v35  ;;  %v3665_v32 = vld [vmem:[#allocation6 + $0xa4] ss:$16 sps:$4 sm:$0xff]  }
  0xcf   :  { %1553 = vmatprep.subr.bf16.mxu1 %v3578_v34  ;;  %v3666_v34 = vld [vmem:[#allocation6 + $0x80] ss:$16 sps:$4 sm:$0xff]   ;;  %v3713_v35 = vld [vmem:[#allocation6 + $0x2e4] ss:$16 sps:$4 sm:$0xff]  }
  0xd1   :  { %1517 = vmatpush1.bf16.msra.mxu0 %v3579_v38  ;;  %v3717_v38 = vld [vmem:[#allocation6 + $0x2c0] ss:$16 sps:$4 sm:$0xff]  }
  0xd2   :  { %1554 = vmatpush1.bf16.msra.mxu1 %v3576_v37  ;;  %1518 = vmatprep.subr.bf16.mxu0 %v3587_v39  ;;  %v3671_v37 = vld [vmem:[#allocation6 + $0x64] ss:$16 sps:$4 sm:$0xff]   ;;  %v3672_v39 = vld [vmem:[#allocation6 + $0x40] ss:$16 sps:$4 sm:$0xff]  }
  0xd3   :  { %1555 = vmatprep.subr.bf16.mxu1 %v3584_v52  ;;  %v3719_v52 = vld [vmem:[#allocation6 + $0x2c4] ss:$16 sps:$4 sm:$0xff]  }
  0xd5   :  { %1519 = vmatpush1.bf16.msra.mxu0 %v3585_v8  ;;  %v3725_v8 = vld [vmem:[#allocation6 + $0x2a4] ss:$16 sps:$4 sm:$0xff]  }
  0xd6   :  { %1556 = vmatpush1.bf16.msra.mxu1 %v3582_v40  ;;  %1520 = vmatprep.subr.bf16.mxu0 %v3593_v42  ;;  %v3723_v40 = vld [vmem:[#allocation6 + $0x2a0] ss:$16 sps:$4 sm:$0xff]  }
  0xd7   :  { %1557 = vmatprep.subr.bf16.mxu1 %v3590_v41  ;;  %v3677_v41 = vld [vmem:[#allocation6 + $0x24] ss:$16 sps:$4 sm:$0xff]   ;;  %v3675_v42 = vld [vmem:[#allocation6 + $0x20] ss:$16 sps:$4 sm:$0xff]  }
  0xd9   :  { %1521 = vmatpush1.bf16.msra.mxu0 %v3591_v44  ;;  %v3731_v44 = vld [vmem:[#allocation6 + $0x284] ss:$16 sps:$4 sm:$0xff]  }
  0xda   :  { %1558 = vmatpush1.bf16.msra.mxu1 %v3588_v43  ;;  %1522 = vmatprep.subr.bf16.mxu0 %v3599_v45  ;;  %v3729_v43 = vld [vmem:[#allocation6 + $0x280] ss:$16 sps:$4 sm:$0xff]  }
  0xdb   :  { %1559 = vmatprep.subr.bf16.mxu1 %v3596_v36  ;;  %v3680_v36 = vld [vmem:[#allocation6 + $0x4] ss:$16 sps:$4 sm:$0xff]   ;;  %v3678_v45 = vld [vmem:[#allocation6] ss:$16 sps:$4 sm:$0xff]  }
  0xdd   :  { %1523 = vmatpush1.bf16.msra.mxu0 %v3597_v47  ;;  %v3737_v47 = vld [vmem:[#allocation6 + $0x264] ss:$16 sps:$4 sm:$0xff]  }
  0xde   :  { %1560 = vmatpush1.bf16.msra.mxu1 %v3594_v46  ;;  %1524 = vmatprep.subr.bf16.mxu0 %v3605_v49  ;;  %v3735_v46 = vld [vmem:[#allocation6 + $0x260] ss:$16 sps:$4 sm:$0xff]  }
  0xdf   :  { %1561 = vmatprep.subr.bf16.mxu1 %v3602_v48  ;;  %v3683_v48 = vld [vmem:[#allocation6 + $0x1e4] ss:$16 sps:$4 sm:$0xff]   ;;  %v3681_v49 = vld [vmem:[#allocation6 + $0x1e0] ss:$16 sps:$4 sm:$0xff]  }
  0xe1   :  { %1525 = vmatpush2.bf16.msra.mxu0 %v3603_v51  ;;  %v3743_v51 = vld [vmem:[#allocation6 + $0x244] ss:$16 sps:$4 sm:$0xff]  }
  0xe2   :  { %1562 = vmatpush1.bf16.msra.mxu1 %v3600_v50  ;;  %1526 = vmatprep.subr.bf16.mxu0 %v3611_v54  ;;  %v3741_v50 = vld [vmem:[#allocation6 + $0x240] ss:$16 sps:$4 sm:$0xff]  }
  0xe3   :  { %1563 = vmatprep.subr.bf16.mxu1 %v3608_v53  ;;  %v3686_v53 = vld [vmem:[#allocation6 + $0x1c4] ss:$16 sps:$4 sm:$0xff]   ;;  %v3684_v54 = vld [vmem:[#allocation6 + $0x1c0] ss:$16 sps:$4 sm:$0xff]  }
  0xe5   :  { %1527 = vmatpush2.bf16.msra.mxu0 %v3609_v56  ;;  %v3749_v56 = vld [vmem:[#allocation6 + $0x224] ss:$16 sps:$4 sm:$0xff]  }
  0xe6   :  { %1564 = vmatpush1.bf16.msra.mxu1 %v3606_v55  ;;  %1528 = vmatprep.subr.bf16.mxu0 %v3617_v58  ;;  %v3747_v55 = vld [vmem:[#allocation6 + $0x220] ss:$16 sps:$4 sm:$0xff]  }
  0xe7   :  { %1565 = vmatprep.subr.bf16.mxu1 %v3614_v57  ;;  %v3689_v57 = vld [vmem:[#allocation6 + $0x1a4] ss:$16 sps:$4 sm:$0xff]   ;;  %v3687_v58 = vld [vmem:[#allocation6 + $0x1a0] ss:$16 sps:$4 sm:$0xff]  }
  0xe9   :  { %1529 = vmatpush2.bf16.msra.mxu0 %v3615_v60  ;;  %v3755_v60 = vld [vmem:[#allocation6 + $0x204] ss:$16 sps:$4 sm:$0xff]  }
  0xea   :  { %1566 = vmatpush2.bf16.msra.mxu1 %v3612_v59  ;;  %1530 = vmatprep.subr.bf16.mxu0 %v3623_v62  ;;  %v3753_v59 = vld [vmem:[#allocation6 + $0x200] ss:$16 sps:$4 sm:$0xff]  }
  0xeb   :  { %1567 = vmatprep.subr.bf16.mxu1 %v3620_v61  ;;  %v3692_v61 = vld [vmem:[#allocation6 + $0x184] ss:$16 sps:$4 sm:$0xff]   ;;  %v3690_v62 = vld [vmem:[#allocation6 + $0x180] ss:$16 sps:$4 sm:$0xff]  }
  0xed   :  { %1531 = vmatpush2.bf16.msra.mxu0 %v3621_v0  ;;  %v3761_v0 = vld [vmem:[#allocation6 + $0x3e4] ss:$16 sps:$4 sm:$0xff]  }
  0xee   :  { %1568 = vmatpush2.bf16.msra.mxu1 %v3618_v63  ;;  %1532 = vmatprep.subr.bf16.mxu0 %v3629_v2  ;;  %v3759_v63 = vld [vmem:[#allocation6 + $0x3e0] ss:$16 sps:$4 sm:$0xff]  }
  0xef   :  { %1569 = vmatprep.subr.bf16.mxu1 %v3626_v1  ;;  %v3695_v1 = vld [vmem:[#allocation6 + $0x164] ss:$16 sps:$4 sm:$0xff]   ;;  %v3693_v2 = vld [vmem:[#allocation6 + $0x160] ss:$16 sps:$4 sm:$0xff]  }
  0xf1   :  { %1533 = vmatpush2.bf16.msra.mxu0 %v3627_v4  ;;  %v3767_v4 = vld [vmem:[#allocation6 + $0x3c4] ss:$16 sps:$4 sm:$0xff]  }
  0xf2   :  { %1570 = vmatpush2.bf16.msra.mxu1 %v3624_v3  ;;  %1534 = vmatprep.subr.bf16.mxu0 %v3635_v6  ;;  %v3765_v3 = vld [vmem:[#allocation6 + $0x3c0] ss:$16 sps:$4 sm:$0xff]  }
  0xf3   :  { %1571 = vmatprep.subr.bf16.mxu1 %v3632_v5  ;;  %v3698_v5 = vld [vmem:[#allocation6 + $0x144] ss:$16 sps:$4 sm:$0xff]   ;;  %v3696_v6 = vld [vmem:[#allocation6 + $0x140] ss:$16 sps:$4 sm:$0xff]  }
  0xf5   :  { %1535 = vmatpush2.bf16.msra.mxu0 %v3633_v10  ;;  %v3773_v10 = vld [vmem:[#allocation6 + $0x3a4] ss:$16 sps:$4 sm:$0xff]  }
  0xf6   :  { %1572 = vmatpush2.bf16.msra.mxu1 %v3630_v7  ;;  %1536 = vmatprep.subr.bf16.mxu0 %v3641_v12  ;;  %v3771_v7 = vld [vmem:[#allocation6 + $0x3a0] ss:$16 sps:$4 sm:$0xff]  }
  0xf7   :  { %1573 = vmatprep.subr.bf16.mxu1 %v3638_v11  ;;  %v3701_v11 = vld [vmem:[#allocation6 + $0x124] ss:$16 sps:$4 sm:$0xff]   ;;  %v3699_v12 = vld [vmem:[#allocation6 + $0x120] ss:$16 sps:$4 sm:$0xff]  }
  0xf9   :  { %1537 = vmatpush2.bf16.msra.mxu0 %v3639_v14  ;;  %v3779_v14 = vld [vmem:[#allocation6 + $0x384] ss:$16 sps:$4 sm:$0xff]  }
  0xfa   :  { %1574 = vmatpush2.bf16.msra.mxu1 %v3636_v13  ;;  %1538 = vmatprep.subr.bf16.mxu0 %v3647_v17  ;;  %v3777_v13 = vld [vmem:[#allocation6 + $0x380] ss:$16 sps:$4 sm:$0xff]  }
  0xfb   :  { %1575 = vmatprep.subr.bf16.mxu1 %v3644_v15  ;;  %v3704_v15 = vld [vmem:[#allocation6 + $0x104] ss:$16 sps:$4 sm:$0xff]  }
  0xfd   :  { %1539 = vmatpush2.bf16.msra.mxu0 %v3645_v21  ;;  %v3702_v21 = vld [vmem:[#allocation6 + $0x100] ss:$16 sps:$4 sm:$0xff]  }
  0xfe   :  { %1576 = vmatpush2.bf16.msra.mxu1 %v3642_v18  ;;  %1604 = vmatprep.subr.bf16.mxu0 %v3653_v23 }
  0xff   :  { %1577 = vmatprep.subr.bf16.mxu1 %v3650_v22  ;;  %v3785_v22 = vld [vmem:[#allocation6 + $0x364] ss:$16 sps:$4 sm:$0xff]  }
 0x100   :  { %1541 = vmatmul.mubr.bf16.vlgmr.msra.gmra.mxu0 %v4056_v9  ;;  %v3668_v9 = vld [vmem:[#allocation6 + $0x84] ss:$16 sps:$4 sm:$0xff]  }
 0x101   :  { %1605 = vmatpush1.bf16.msra.mxu0 %v3651_v25  ;;  %1622 = vmatprep.mubr.bf16.mxu0 %v3996_v16  ;;  %v3711_v16 = vld [vmem:[#allocation6 + $0x2e0] ss:$16 sps:$4 sm:$0xff]   ;;  %v3707_v25 = vld [vmem:[#allocation6 + $0xec] ss:$16 sps:$4 sm:$0xff]  }
 0x102   :  { %1578 = vmatpush2.bf16.msra.mxu1 %v3648_v24  ;;  %2428 = vmatprep.subr.bf16.mxu0 %v3659_v27 }
 0x103   :  { %1579 = vmatprep.subr.bf16.mxu1 %v3656_v26  ;;  %v3783_v26 = vld [vmem:[#allocation6 + $0x360] ss:$16 sps:$4 sm:$0xff]  }
 0x106   :  { %1580 = vmatpush2.bf16.msra.mxu1 %v3654_v28 }
 0x107   :  { %2469 = vmatprep.subr.bf16.mxu1 %v3713_v35 }
 0x108   :  { %3147 = vmatmul.mubr.msk.bf16.vlgmr.msra.gmra.mxu0 %vm1299_vm0, %v4061_v19  ;;  %v3674_v19 = vld [vmem:[#allocation6 + $0x44] ss:$16 sps:$4 sm:$0xff]  }
 0x109   :  { %1582 = vmatmul.mubr.bf16.vlgmr.msra.gmra.mxu1 %v4069_v20  ;;  %2429 = vmatpush1.bf16.msra.mxu0 %v3657_v29  ;;  %v3669_v20 = vld [vmem:[#allocation6 + $0x60] ss:$16 sps:$4 sm:$0xff]   ;;  %v3791_v29 = vld [vmem:[#allocation6 + $0x344] ss:$16 sps:$4 sm:$0xff]  }
 0x10a   :  { %2430 = vmatprep.subr.bf16.mxu0 %v3662_v30  ;;  %2470 = vmatpush1.bf16.msra.mxu1 %v3711_v16  ;;  %v3795_v16 = vld [vmem:[#allocation6 + $0x320] ss:$16 sps:$4 sm:$0xff]  }
 0x10b   :  { %2471 = vmatprep.subr.bf16.mxu1 %v3719_v52  ;;  %v3803_v52 = vld [vmem:[#allocation6 + $0x2ec] ss:$16 sps:$4 sm:$0xff]  }
 0x10d   :  { %2431 = vmatpush1.bf16.msra.mxu0 %v3660_v31 }
 0x10e   :  { %2432 = vmatprep.subr.bf16.mxu0 %v3665_v32  ;;  %2472 = vmatpush1.bf16.msra.mxu1 %v3717_v38  ;;  %v3789_v32 = vld [vmem:[#allocation6 + $0x340] ss:$16 sps:$4 sm:$0xff]  }
 0x10f   :  { %2473 = vmatprep.subr.bf16.mxu1 %v3725_v8  ;;  %v3798_v38 = vld [vmem:[#allocation6 + $0x300] ss:$16 sps:$4 sm:$0xff]  }
 0x110   :  { %v4083_v8 = vld [vmem:[#allocation9] sm:$0xf] }
 0x111   :  { %2433 = vmatpush1.bf16.msra.mxu0 %v3663_v33 }
 0x112   :  { %2434 = vmatprep.subr.bf16.mxu0 %v3668_v9  ;;  %2474 = vmatpush1.bf16.msra.mxu1 %v3723_v40  ;;  %v3797_v9 = vld [vmem:[#allocation6 + $0x324] ss:$16 sps:$4 sm:$0xff]  }
 0x113   :  { %2475 = vmatprep.subr.bf16.mxu1 %v3731_v44 }
 0x115   :  { %2435 = vmatpush1.bf16.msra.mxu0 %v3666_v34 }
 0x116   :  { %2436 = vmatprep.subr.bf16.mxu0 %v3671_v37  ;;  %2476 = vmatpush1.bf16.msra.mxu1 %v3729_v43  ;;  %v3800_v37 = vld [vmem:[#allocation6 + $0x304] ss:$16 sps:$4 sm:$0xff]  }
 0x117   :  { %2477 = vmatprep.subr.bf16.mxu1 %v3737_v47 }
 0x119   :  { %2437 = vmatpush1.bf16.msra.mxu0 %v3669_v20 }
 0x11a   :  { %2438 = vmatprep.subr.bf16.mxu0 %v3674_v19  ;;  %2478 = vmatpush1.bf16.msra.mxu1 %v3735_v46  ;;  %v299_v19 = vlaneseq }
 0x11b   :  { %2479 = vmatprep.subr.bf16.mxu1 %v3743_v51 }
 0x11d   :  { %2439 = vmatpush1.bf16.msra.mxu0 %v3672_v39  ;;  %v4080_v39 = vshrl.u32 %v299_v19, 7 }
 0x11e   :  { %2440 = vmatprep.subr.bf16.mxu0 %v3677_v41  ;;  %2480 = vmatpush1.bf16.msra.mxu1 %v3741_v50 }
 0x11f   :  { %2481 = vmatprep.subr.bf16.mxu1 %v3749_v56  ;;  %v301_v40 = vsub.s32 0, %v4080_v39  ;;  %v305_v41 = vsub.s32 1, %v4080_v39 }
 0x121   :  { %2441 = vmatpush1.bf16.msra.mxu0 %v3675_v42  ;;  %v302_v42 = vrot.slane %v4083_v8, %v301_v40  ;;  %v306_v43 = vrot.slane %v4083_v8, %v305_v41 }
 0x122   :  { %2442 = vmatprep.subr.bf16.mxu0 %v3680_v36  ;;  %2482 = vmatpush1.bf16.msra.mxu1 %v3747_v55 }
 0x123   :  { %2483 = vmatprep.subr.bf16.mxu1 %v3755_v60  ;;  %v3705_v60 = vld [vmem:[#allocation6 + $0xe8] ss:$16 sps:$4 sm:$0xff]  }
 0x125   :  { %2443 = vmatpush1.bf16.msra.mxu0 %v3678_v45 }
 0x126   :  { %2444 = vmatprep.subr.bf16.mxu0 %v3683_v48  ;;  %2484 = vmatpush1.bf16.msra.mxu1 %v3753_v59 }
 0x127   :  { %2485 = vmatprep.subr.bf16.mxu1 %v3761_v0 }
 0x129   :  { %2445 = vmatpush2.bf16.msra.mxu0 %v3681_v49 }
 0x12a   :  { %2446 = vmatprep.subr.bf16.mxu0 %v3686_v53  ;;  %2486 = vmatpush2.bf16.msra.mxu1 %v3759_v63  ;;  %v3710_v63 = vld [vmem:[#allocation6 + $0xcc] ss:$16 sps:$4 sm:$0xff]  }
 0x12b   :  { %2487 = vmatprep.subr.bf16.mxu1 %v3767_v4  ;;  %v3714_v4 = vld [vmem:[#allocation6 + $0xa8] ss:$16 sps:$4 sm:$0xff]  }
 0x12d   :  { %2447 = vmatpush2.bf16.msra.mxu0 %v3684_v54 }
 0x12e   :  { %2448 = vmatprep.subr.bf16.mxu0 %v3689_v57  ;;  %2488 = vmatpush2.bf16.msra.mxu1 %v3765_v3  ;;  %v3716_v3 = vld [vmem:[#allocation6 + $0xac] ss:$16 sps:$4 sm:$0xff]  }
 0x12f   :  { %2489 = vmatprep.subr.bf16.mxu1 %v3773_v10  ;;  %v3726_v10 = vld [vmem:[#allocation6 + $0x68] ss:$16 sps:$4 sm:$0xff]  }
 0x131   :  { %2449 = vmatpush2.bf16.msra.mxu0 %v3687_v58 }
 0x132   :  { %2450 = vmatprep.subr.bf16.mxu0 %v3692_v61  ;;  %2490 = vmatpush2.bf16.msra.mxu1 %v3771_v7  ;;  %v3728_v7 = vld [vmem:[#allocation6 + $0x6c] ss:$16 sps:$4 sm:$0xff]  }
 0x133   :  { %2491 = vmatprep.subr.bf16.mxu1 %v3779_v14  ;;  %v3738_v14 = vld [vmem:[#allocation6 + $0x28] ss:$16 sps:$4 sm:$0xff]  }
 0x135   :  { %2451 = vmatpush2.bf16.msra.mxu0 %v3690_v62 }
 0x136   :  { %2452 = vmatprep.subr.bf16.mxu0 %v3695_v1  ;;  %2492 = vmatpush2.bf16.msra.mxu1 %v3777_v13  ;;  %v3708_v1 = vld [vmem:[#allocation6 + $0xc8] ss:$16 sps:$4 sm:$0xff]   ;;  %v3740_v13 = vld [vmem:[#allocation6 + $0x2c] ss:$16 sps:$4 sm:$0xff]  }
 0x137   :  { %2493 = vmatprep.subr.bf16.mxu1 %v3785_v22  ;;  %v3758_v22 = vld [vmem:[#allocation6 + $0x1cc] ss:$16 sps:$4 sm:$0xff]  }
 0x139   :  { %2453 = vmatpush2.bf16.msra.mxu0 %v3693_v2 }
 0x13a   :  { %2454 = vmatprep.subr.bf16.mxu0 %v3698_v5  ;;  %2494 = vmatpush2.bf16.msra.mxu1 %v3783_v26  ;;  %v3722_v5 = vld [vmem:[#allocation6 + $0x8c] ss:$16 sps:$4 sm:$0xff]  }
 0x13b   :  { %2495 = vmatprep.subr.bf16.mxu1 %v3791_v29  ;;  %v3770_v26 = vld [vmem:[#allocation6 + $0x18c] ss:$16 sps:$4 sm:$0xff]   ;;  %v3774_v29 = vld [vmem:[#allocation6 + $0x168] ss:$16 sps:$4 sm:$0xff]  }
 0x13d   :  { %2455 = vmatpush2.bf16.msra.mxu0 %v3696_v6  ;;  %v3720_v6 = vld [vmem:[#allocation6 + $0x88] ss:$16 sps:$4 sm:$0xff]  }
 0x13e   :  { %2456 = vmatprep.subr.bf16.mxu0 %v3701_v11  ;;  %2496 = vmatpush2.bf16.msra.mxu1 %v3789_v32  ;;  %v3734_v11 = vld [vmem:[#allocation6 + $0x4c] ss:$16 sps:$4 sm:$0xff]   ;;  %v3780_v32 = vld [vmem:[#allocation6 + $0x148] ss:$16 sps:$4 sm:$0xff]  }
 0x13f   :  { %2497 = vmatprep.subr.bf16.mxu1 %v3797_v9  ;;  %v313_v9 = vsub.s32 3, %v4080_v39 }
 0x140   :  { %v1337_v17 = vpop.f32.mrf.mxu0 }
 0x141   :  { %v1378_v18 = vpop.f32.mrf.mxu1  ;;  %2457 = vmatpush2.bf16.msra.mxu0 %v3699_v12  ;;  %v1338_v44 = vadd.f32 %v1337_v17, %v302_v42  ;;  %v3732_v12 = vld [vmem:[#allocation6 + $0x48] ss:$16 sps:$4 sm:$0xff]  }
 0x142   :  { %v1339_v23 = vpop.f32.mrf.mxu0  ;;  %2458 = vmatprep.subr.bf16.mxu0 %v3704_v15  ;;  %2498 = vmatpush2.bf16.msra.mxu1 %v3795_v16  ;;  %v3746_v15 = vld [vmem:[#allocation6 + $0xc] ss:$16 sps:$4 sm:$0xff]   ;;  %v3744_v17 = vld [vmem:[#allocation6 + $0x8] ss:$16 sps:$4 sm:$0xff]  }
 0x143   :  { %v1380_v24 = vpop.f32.mrf.mxu1  ;;  %2499 = vmatprep.subr.bf16.mxu1 %v3800_v37  ;;  %v1340_v36 = vadd.f32 %v1339_v23, %v306_v43  ;;  %v1379_v45 = vadd.f32 %v1378_v18, %v1338_v44  ;;  %v3752_v18 = vld [vmem:[#allocation6 + $0x1ec] ss:$16 sps:$4 sm:$0xff]   ;;  %v3756_v23 = vld [vmem:[#allocation6 + $0x1c8] ss:$16 sps:$4 sm:$0xff]  }
 0x144   :  { %v1341_v27 = vpop.f32.mrf.mxu0  ;;  %v3792_v42 = vld [vmem:[#allocation6 + $0x108] ss:$16 sps:$4 sm:$0xff]  }
 0x145   :  { %v1382_v28 = vpop.f32.mrf.mxu1  ;;  %2459 = vmatpush2.bf16.msra.mxu0 %v3702_v21  ;;  %v1381_v47 = vadd.f32 %v1380_v24, %v1340_v36  ;;  %v3750_v21 = vld [vmem:[#allocation6 + $0x1e8] ss:$16 sps:$4 sm:$0xff]   ;;  %v3764_v24 = vld [vmem:[#allocation6 + $0x1ac] ss:$16 sps:$4 sm:$0xff]  }
 0x146   :  { %v1342_v30 = vpop.f32.mrf.mxu0  ;;  %2510 = vmatprep.subr.bf16.mxu0 %v3707_v25  ;;  %2500 = vmatpush2.bf16.msra.mxu1 %v3798_v38  ;;  %v3762_v25 = vld [vmem:[#allocation6 + $0x1a8] ss:$16 sps:$4 sm:$0xff]   ;;  %v3776_v28 = vld [vmem:[#allocation6 + $0x16c] ss:$16 sps:$4 sm:$0xff]   ;;  %v314_v38 = vrot.slane %v4083_v8, %v313_v9 }
 0x147   :  { %v1383_v31 = vpop.f32.mrf.mxu1  ;;  %2551 = vmatprep.subr.bf16.mxu1 %v3803_v52  ;;  %v3768_v27 = vld [vmem:[#allocation6 + $0x188] ss:$16 sps:$4 sm:$0xff]   ;;  %v3782_v30 = vld [vmem:[#allocation6 + $0x14c] ss:$16 sps:$4 sm:$0xff]  }
 0x148   :  { %v309_v31 = vsub.s32 2, %v4080_v39 }
 0x149   :  { %v1460_v33 = vpop.f32.mrf.mxu1 }
 0x14a   :  { %v310_v16 = vrot.slane %v4083_v8, %v309_v31 }
 0x14b   :  { %v1462_v34 = vpop.f32.mrf.mxu1 }
 0x14d   :  { %v1464_v35 = vpop.f32.mrf.mxu1 }
 0x14e   :  { %v3786_v35 = vld [vmem:[#allocation6 + $0x128] ss:$16 sps:$4 sm:$0xff]  }
 0x14f   :  { %v1465_v20 = vpop.f32.mrf.mxu1 }
 0x150   :  { %v3794_v20 = vld [vmem:[#allocation6 + $0x10c] ss:$16 sps:$4 sm:$0xff]  }
 0x180   :  { %v1419_v46 = vpop.f32.mrf.mxu0 }
 0x181   :  { %v1420_v48 = vadd.f32 %v1419_v46, %v1379_v45 }
 0x182   :  { %v1421_v49 = vpop.f32.mrf.mxu0 }
 0x183   :  { %v1461_v50 = vadd.f32 %v1460_v33, %v1420_v48  ;;  %v1422_v51 = vadd.f32 %v1421_v49, %v1381_v47  ;;  %v3788_v33 = vld [vmem:[#allocation6 + $0x12c] ss:$16 sps:$4 sm:$0xff]  }
 0x184   :  { %v1423_v53 = vpop.f32.mrf.mxu0 }
 0x185   :  { %v1463_v54 = vadd.f32 %v1462_v34, %v1422_v51  ;;  %v1631_v55 = vmax.f32 %v1461_v50, 0.0 }
 0x186   :  { %v1424_v56 = vpop.f32.mrf.mxu0 }
 0x187   :  { %v1632_v57 = vmax.f32 %v1463_v54, 0.0  ;;  %v4094_v61 = vpack.c.bf16 %v1631_v55, %v1631_v55 }
 0x189   :  { %v4092_v58 = vpop.f32.mrf.mxu1  ;;  %v1636_v59 = vpack.c.bf16 %v1632_v57, %v1632_v57 }
 0x18a   :  { %v1502_v19 = vadd.f32 %v4092_v58, %v310_v16  ;;  %v3839_v16 = vld [vmem:[#allocation6 + $0x36c] ss:$16 sps:$4 sm:$0xff]  }
 0x18b   :  { %v4096_v62 = vpop.f32.mrf.mxu1  ;;  %2460 = vmatprep.mubr.bf16.mxu0 %v1636_v59 }
 0x18c   :  { %2461 = vmatmul.mubr.bf16.vlgmr.msra.gmra.mxu0 %v4094_v61  ;;  %v1504_v44 = vadd.f32 %v4096_v62, %v314_v38  ;;  %v3801_v62 = vld [vmem:[#allocation6 + $0x2e8] ss:$16 sps:$4 sm:$0xff]   ;;  %v3845_v38 = vld [vmem:[#allocation6 + $0x32c] ss:$16 sps:$4 sm:$0xff]  }
 0x18d   :  { %v1505_v0 = vpop.f32.mrf.mxu1  ;;  %2511 = vmatpush1.bf16.msra.mxu0 %v3705_v60  ;;  %2542 = vmatprep.mubr.bf16.mxu0 %v1636_v59 }
 0x18e   :  { %2512 = vmatprep.subr.bf16.mxu0 %v3710_v63  ;;  %v3806_v0 = vld [vmem:[#allocation6 + $0x2cc] ss:$16 sps:$4 sm:$0xff]  }
 0x18f   :  { %v1506_v2 = vpop.f32.mrf.mxu1 }
 0x190   :  { %v3850_v2 = vld [vmem:[#allocation7 + $0x38] sm:$0xff]  }
 0x191   :  { %2513 = vmatpush1.bf16.msra.mxu0 %v3708_v1  ;;  %v3849_v1 = vld [vmem:[#allocation7 + $0x78] sm:$0xff]  }
 0x192   :  { %2514 = vmatprep.subr.bf16.mxu0 %v3716_v3  ;;  %v3851_v3 = vld [vmem:[#allocation7 + $0x70] sm:$0xff]  }
 0x195   :  { %2515 = vmatpush1.bf16.msra.mxu0 %v3714_v4  ;;  %v3809_v4 = vld [vmem:[#allocation6 + $0x2ac] ss:$16 sps:$4 sm:$0xff]  }
 0x196   :  { %2516 = vmatprep.subr.bf16.mxu0 %v3722_v5  ;;  %v3852_v5 = vld [vmem:[#allocation7 + $0x30] sm:$0xff]  }
 0x199   :  { %2517 = vmatpush1.bf16.msra.mxu0 %v3720_v6  ;;  %v3853_v6 = vld [vmem:[#allocation7 + $0x68] sm:$0xff]  }
 0x19a   :  { %2518 = vmatprep.subr.bf16.mxu0 %v3728_v7  ;;  %v3807_v7 = vld [vmem:[#allocation6 + $0x2a8] ss:$16 sps:$4 sm:$0xff]  }
 0x19d   :  { %2519 = vmatpush1.bf16.msra.mxu0 %v3726_v10  ;;  %v3812_v10 = vld [vmem:[#allocation6 + $0x28c] ss:$16 sps:$4 sm:$0xff]  }
 0x19e   :  { %2520 = vmatprep.subr.bf16.mxu0 %v3734_v11  ;;  %v3854_v11 = vld [vmem:[#allocation7 + $0x28] sm:$0xff]  }
 0x1a1   :  { %2521 = vmatpush1.bf16.msra.mxu0 %v3732_v12  ;;  %v3855_v12 = vld [vmem:[#allocation7 + $0x60] sm:$0xff]  }
 0x1a2   :  { %2522 = vmatprep.subr.bf16.mxu0 %v3740_v13  ;;  %v3810_v13 = vld [vmem:[#allocation6 + $0x288] ss:$16 sps:$4 sm:$0xff]  }
 0x1a5   :  { %2523 = vmatpush1.bf16.msra.mxu0 %v3738_v14  ;;  %v3815_v14 = vld [vmem:[#allocation6 + $0x26c] ss:$16 sps:$4 sm:$0xff]  }
 0x1a6   :  { %2524 = vmatprep.subr.bf16.mxu0 %v3746_v15  ;;  %v3856_v15 = vld [vmem:[#allocation7 + $0x20] sm:$0xff]  }
 0x1a9   :  { %2525 = vmatpush1.bf16.msra.mxu0 %v3744_v17  ;;  %v3813_v17 = vld [vmem:[#allocation6 + $0x268] ss:$16 sps:$4 sm:$0xff]  }
 0x1aa   :  { %2526 = vmatprep.subr.bf16.mxu0 %v3752_v18  ;;  %v3818_v18 = vld [vmem:[#allocation6 + $0x24c] ss:$16 sps:$4 sm:$0xff]  }
 0x1ad   :  { %2527 = vmatpush2.bf16.msra.mxu0 %v3750_v21  ;;  %v3816_v21 = vld [vmem:[#allocation6 + $0x248] ss:$16 sps:$4 sm:$0xff]  }
 0x1ae   :  { %2528 = vmatprep.subr.bf16.mxu0 %v3758_v22  ;;  %v3821_v22 = vld [vmem:[#allocation6 + $0x22c] ss:$16 sps:$4 sm:$0xff]  }
 0x1b1   :  { %2529 = vmatpush2.bf16.msra.mxu0 %v3756_v23  ;;  %v3819_v23 = vld [vmem:[#allocation6 + $0x228] ss:$16 sps:$4 sm:$0xff]  }
 0x1b2   :  { %2530 = vmatprep.subr.bf16.mxu0 %v3764_v24  ;;  %v3824_v24 = vld [vmem:[#allocation6 + $0x20c] ss:$16 sps:$4 sm:$0xff]  }
 0x1b5   :  { %2531 = vmatpush2.bf16.msra.mxu0 %v3762_v25  ;;  %v3822_v25 = vld [vmem:[#allocation6 + $0x208] ss:$16 sps:$4 sm:$0xff]  }
 0x1b6   :  { %2532 = vmatprep.subr.bf16.mxu0 %v3770_v26  ;;  %v3827_v26 = vld [vmem:[#allocation6 + $0x3ec] ss:$16 sps:$4 sm:$0xff]  }
 0x1b9   :  { %2533 = vmatpush2.bf16.msra.mxu0 %v3768_v27  ;;  %v3825_v27 = vld [vmem:[#allocation6 + $0x3e8] ss:$16 sps:$4 sm:$0xff]  }
 0x1ba   :  { %2534 = vmatprep.subr.bf16.mxu0 %v3776_v28  ;;  %v3830_v28 = vld [vmem:[#allocation6 + $0x3cc] ss:$16 sps:$4 sm:$0xff]  }
 0x1bd   :  { %2535 = vmatpush2.bf16.msra.mxu0 %v3774_v29  ;;  %v3828_v29 = vld [vmem:[#allocation6 + $0x3c8] ss:$16 sps:$4 sm:$0xff]  }
 0x1be   :  { %2536 = vmatprep.subr.bf16.mxu0 %v3782_v30  ;;  %v3833_v30 = vld [vmem:[#allocation6 + $0x3ac] ss:$16 sps:$4 sm:$0xff]  }
 0x1c0   :  { %v1542_v34 = vpop.f32.mrf.mxu0 }
 0x1c1   :  { %2537 = vmatpush2.bf16.msra.mxu0 %v3780_v32  ;;  %v1543_v36 = vadd.f32 %v1542_v34, %v1502_v19  ;;  %v3831_v32 = vld [vmem:[#allocation6 + $0x3a8] ss:$16 sps:$4 sm:$0xff]   ;;  %v3848_v19 = vld [vmem:[#allocation6 + $0x30c] ss:$16 sps:$4 sm:$0xff]  }
 0x1c2   :  { %v1544_v37 = vpop.f32.mrf.mxu0  ;;  %2538 = vmatprep.subr.bf16.mxu0 %v3788_v33  ;;  %v3836_v33 = vld [vmem:[#allocation6 + $0x38c] ss:$16 sps:$4 sm:$0xff]   ;;  %v3834_v34 = vld [vmem:[#allocation6 + $0x388] ss:$16 sps:$4 sm:$0xff]  }
 0x1c3   :  { %v1545_v47 = vadd.f32 %v1544_v37, %v1504_v44  ;;  %v3842_v37 = vld [vmem:[#allocation6 + $0x34c] ss:$16 sps:$4 sm:$0xff]  }
 0x1c4   :  { %v1546_v52 = vpop.f32.mrf.mxu0  ;;  %v3858_v44 = vld [vmem:[#allocation7 + $0x18] sm:$0xff]  }
 0x1c5   :  { %2539 = vmatpush2.bf16.msra.mxu0 %v3786_v35  ;;  %v3837_v35 = vld [vmem:[#allocation6 + $0x368] ss:$16 sps:$4 sm:$0xff]  }
 0x1c6   :  { %v1547_v43 = vpop.f32.mrf.mxu0  ;;  %2540 = vmatprep.subr.bf16.mxu0 %v3794_v20  ;;  %v3840_v20 = vld [vmem:[#allocation6 + $0x348] ss:$16 sps:$4 sm:$0xff]  }
 0x1c7   :  { %v3843_v52 = vld [vmem:[#allocation6 + $0x328] ss:$16 sps:$4 sm:$0xff]  }
 0x1c8   :  { %v1624_v46 = vpop.f32.mrf.mxu0  ;;  %v3857_v43 = vld [vmem:[#allocation7 + $0x58] sm:$0xff]  }
 0x1c9   :  { %v1583_v45 = vpop.f32.mrf.mxu1  ;;  %2541 = vmatpush2.bf16.msra.mxu0 %v3792_v42  ;;  %v3846_v42 = vld [vmem:[#allocation6 + $0x308] ss:$16 sps:$4 sm:$0xff]  }
 0x1ca   :  { %v1584_v48 = vadd.f32 %v1583_v45, %v1543_v36  ;;  %v1626_v50 = vpop.f32.mrf.mxu0  ;;  %3309 = vmatprep.subr.bf16.mxu0 %v3849_v1  ;;  %v3859_v36 = vld [vmem:[#allocation7 + $0x50] sm:$0xff]  }
 0x1cb   :  { %v1585_v49 = vpop.f32.mrf.mxu1  ;;  %v3860_v45 = vld [vmem:[#allocation7 + $0x10] sm:$0xff]  }
 0x1cc   :  { %v1625_v51 = vadd.f32 %v1624_v46, %v1584_v48  ;;  %v1586_v53 = vadd.f32 %v1585_v49, %v1545_v47  ;;  %2543 = vmatmul.mubr.bf16.vlgmr.msra.gmra.mxu0 %v4094_v61  ;;  %v1628_v54 = vpop.f32.mrf.mxu0  ;;  %v3804_v61 = vld [vmem:[#allocation6 + $0x2c8] ss:$16 sps:$4 sm:$0xff]   ;;  %v3863_v48 = vld [vmem:[#allocation7 + $0x40] sm:$0xff]  }
 0x1cd   :  { %v1587_v8 = vpop.f32.mrf.mxu1  ;;  %3310 = vmatpush3.bf16.msra.mxu0 %v3850_v2  ;;  %v3861_v46 = vld [vmem:[#allocation7 + $0x48] sm:$0xff]   ;;  %v3864_v49 = vld [vmem:[#allocation7] sm:$0xff]  }
 0x1ce   :  { %v1627_v55 = vadd.f32 %v1626_v50, %v1586_v53  ;;  %v1633_v56 = vmax.f32 %v1625_v51, 0.0  ;;  %v1629_v58 = vpop.f32.mrf.mxu0  ;;  %3311 = vmatprep.subr.bf16.mxu0 %v3851_v3  ;;  %v3862_v47 = vld [vmem:[#allocation7 + $0x8] sm:$0xff]   ;;  %v3865_v50 = vld [vmem:[#allocation7 + $0xf8] sm:$0xff]   ;;  %v3867_v53 = vld [vmem:[#allocation7 + $0xf0] sm:$0xff]  }
 0x1cf   :  { %v1588_v57 = vpop.f32.mrf.mxu1  ;;  %v3866_v51 = vld [vmem:[#allocation7 + $0xb8] sm:$0xff]   ;;  %v3868_v8 = vld [vmem:[#allocation7 + $0xb0] sm:$0xff]   ;;  %v3869_v54 = vld [vmem:[#allocation7 + $0xe8] sm:$0xff]  }
 0x1d0   :  { %v1634_v59 = vmax.f32 %v1627_v55, 0.0  ;;  %v4110_v63 = vpack.c.bf16 %v1633_v56, %v1633_v56  ;;  %v3870_v55 = vld [vmem:[#allocation7 + $0xa8] sm:$0xff]   ;;  %v3871_v56 = vld [vmem:[#allocation7 + $0xe0] sm:$0xff]   ;;  %v3873_v58 = vld [vmem:[#allocation7 + $0xd8] sm:$0xff]  }
 0x1d1   :  { %3312 = vmatpush3.bf16.msra.mxu0 %v3852_v5  ;;  %v3872_v57 = vld [vmem:[#allocation7 + $0xa0] sm:$0xff]   ;;  %v3877_v3 = vld [vmem:[#allocation7 + $0xc8] sm:$0xff]  }
 0x1d2   :  { %v1638_v60 = vpack.c.bf16 %v1634_v59, %v1634_v59  ;;  %3313 = vmatprep.subr.bf16.mxu0 %v3853_v6  ;;  %v3874_v59 = vld [vmem:[#allocation7 + $0x98] sm:$0xff]   ;;  %v3880_v5 = vld [vmem:[#allocation7 + $0x80] sm:$0xff]  }
 0x1d3   :  { %v86_v6 = vld [vmem:[#allocation9 + $0x4] sm:$0xf] }
 0x1d4   :  { %2501 = vmatprep.mubr.bf16.mxu1 %v1638_v60 }
 0x1d5   :  { %2502 = vmatmul.mubr.bf16.vlgmr.msra.gmra.mxu1 %v4110_v63  ;;  %3314 = vmatpush3.bf16.msra.mxu0 %v3854_v11  ;;  %v1771_v11 = vrot.slane %v86_v6, %v301_v40  ;;  %v1779_v40 = vrot.slane %v86_v6, %v309_v31 }
 0x1d6   :  { %2552 = vmatpush1.bf16.msra.mxu1 %v3801_v62  ;;  %2583 = vmatprep.mubr.bf16.mxu1 %v1638_v60  ;;  %v3875_v60 = vld [vmem:[#allocation7 + $0xd0] sm:$0xff]  }
 0x1d7   :  { %2553 = vmatprep.subr.bf16.mxu1 %v3806_v0  ;;  %3315 = vmatprep.subr.bf16.mxu0 %v3855_v12  ;;  %v3876_v62 = vld [vmem:[#allocation7 + $0x90] sm:$0xff]  }
 0x1d9   :  { %3316 = vmatpush3.bf16.msra.mxu0 %v3856_v15 }
 0x1da   :  { %2554 = vmatpush1.bf16.msra.mxu1 %v3804_v61  ;;  %3317 = vmatprep.subr.bf16.mxu0 %v3857_v43  ;;  %v3878_v61 = vld [vmem:[#allocation7 + $0x88] sm:$0xff]  }
 0x1db   :  { %2555 = vmatprep.subr.bf16.mxu1 %v3809_v4  ;;  %v3879_v4 = vld [vmem:[#allocation7 + $0xc0] sm:$0xff]  }
 0x1dd   :  { %3318 = vmatpush3.bf16.msra.mxu0 %v3858_v44 }
 0x1de   :  { %2556 = vmatpush1.bf16.msra.mxu1 %v3807_v7  ;;  %3319 = vmatprep.subr.bf16.mxu0 %v3859_v36 }
 0x1df   :  { %2557 = vmatprep.subr.bf16.mxu1 %v3812_v10 }
 0x1e1   :  { %3320 = vmatpush3.bf16.msra.mxu0 %v3860_v45 }
 0x1e2   :  { %2558 = vmatpush1.bf16.msra.mxu1 %v3810_v13  ;;  %3321 = vmatprep.subr.bf16.mxu0 %v3861_v46  ;;  %v1775_v13 = vrot.slane %v86_v6, %v305_v41  ;;  %v1783_v41 = vrot.slane %v86_v6, %v313_v9  ;;  %v3276_v9 = vld [vmem:[#allocation9 + $0x8] ss:$0 sm:$0xff] }
 0x1e3   :  { %2559 = vmatprep.subr.bf16.mxu1 %v3815_v14 }
 0x1e5   :  { %3322 = vmatpush3.bf16.msra.mxu0 %v3862_v47 }
 0x1e6   :  { %2560 = vmatpush1.bf16.msra.mxu1 %v3813_v17  ;;  %3323 = vmatprep.subr.bf16.mxu0 %v3863_v48 }
 0x1e7   :  { %2561 = vmatprep.subr.bf16.mxu1 %v3818_v18 }
 0x1e9   :  { %3324 = vmatpush3.bf16.msra.mxu0 %v3864_v49 }
 0x1ea   :  { %2562 = vmatpush1.bf16.msra.mxu1 %v3816_v21 }
 0x1eb   :  { %2563 = vmatprep.subr.bf16.mxu1 %v3821_v22 }
 0x1ee   :  { %2564 = vmatpush1.bf16.msra.mxu1 %v3819_v23 }
 0x1ef   :  { %2565 = vmatprep.subr.bf16.mxu1 %v3824_v24 }
 0x1f2   :  { %2566 = vmatpush1.bf16.msra.mxu1 %v3822_v25 }
 0x1f3   :  { %2567 = vmatprep.subr.bf16.mxu1 %v3827_v26 }
 0x1f6   :  { %2568 = vmatpush2.bf16.msra.mxu1 %v3825_v27 }
 0x1f7   :  { %2569 = vmatprep.subr.bf16.mxu1 %v3830_v28 }
 0x1fa   :  { %2570 = vmatpush2.bf16.msra.mxu1 %v3828_v29 }
 0x1fb   :  { %2571 = vmatprep.subr.bf16.mxu1 %v3833_v30 }
 0x1fe   :  { %2572 = vmatpush2.bf16.msra.mxu1 %v3831_v32 }
 0x1ff   :  { %2573 = vmatprep.subr.bf16.mxu1 %v3836_v33 }
 0x202   :  { %2574 = vmatpush2.bf16.msra.mxu1 %v3834_v34 }
 0x203   :  { %2575 = vmatprep.subr.bf16.mxu1 %v3839_v16 }
 0x206   :  { %2576 = vmatpush2.bf16.msra.mxu1 %v3837_v35 }
 0x207   :  { %2577 = vmatprep.subr.bf16.mxu1 %v3842_v37 }
 0x20a   :  { %2578 = vmatpush2.bf16.msra.mxu1 %v3840_v20 }
 0x20b   :  { %2579 = vmatprep.subr.bf16.mxu1 %v3845_v38 }
 0x20e   :  { %2580 = vmatpush2.bf16.msra.mxu1 %v3843_v52 }
 0x20f   :  { %2581 = vmatprep.subr.bf16.mxu1 %v3848_v19 }
 0x212   :  { %2582 = vmatpush2.bf16.msra.mxu1 %v3846_v42 }
 0x213   :  { %3331 = vmatprep.subr.bf16.mxu1 %v3865_v50 }
 0x215   :  { %2584 = vmatmul.mubr.bf16.vlgmr.msra.gmra.mxu1 %v4110_v63 }
 0x216   :  { %3332 = vmatpush3.bf16.msra.mxu1 %v3866_v51 }
 0x217   :  { %3333 = vmatprep.subr.bf16.mxu1 %v3867_v53 }
 0x21a   :  { %3334 = vmatpush3.bf16.msra.mxu1 %v3868_v8 }
 0x21b   :  { %3335 = vmatprep.subr.bf16.mxu1 %v3869_v54 }
 0x21e   :  { %3336 = vmatpush3.bf16.msra.mxu1 %v3870_v55 }
 0x21f   :  { %3337 = vmatprep.subr.bf16.mxu1 %v3871_v56 }
 0x222   :  { %3338 = vmatpush3.bf16.msra.mxu1 %v3872_v57 }
 0x223   :  { %3339 = vmatprep.subr.bf16.mxu1 %v3873_v58 }
 0x226   :  { %3340 = vmatpush3.bf16.msra.mxu1 %v3874_v59 }
 0x227   :  { %3341 = vmatprep.subr.bf16.mxu1 %v3875_v60 }
 0x22a   :  { %3342 = vmatpush3.bf16.msra.mxu1 %v3876_v62 }
 0x22b   :  { %3343 = vmatprep.subr.bf16.mxu1 %v3877_v3 }
 0x22e   :  { %3344 = vmatpush3.bf16.msra.mxu1 %v3878_v61 }
 0x22f   :  { %3345 = vmatprep.subr.bf16.mxu1 %v3879_v4 }
 0x232   :  { %3346 = vmatpush3.bf16.msra.mxu1 %v3880_v5 }
 0x24c   :  { %v2462_v63 = vpop.f32.mrf.mxu0 }
 0x24d   :  { %v2463_v15 = vadd.f32 %v2462_v63, %v1771_v11 }
 0x24e   :  { %v2464_v0 = vpop.f32.mrf.mxu0 }
 0x24f   :  { %v2465_v18 = vadd.f32 %v2464_v0, %v1775_v13 }
 0x250   :  { %v2466_v1 = vpop.f32.mrf.mxu0 }
 0x252   :  { %v2467_v2 = vpop.f32.mrf.mxu0 }
 0x28c   :  { %v2544_v7 = vpop.f32.mrf.mxu0 }
 0x28d   :  { %v2545_v30 = vadd.f32 %v2544_v7, %v1779_v40 }
 0x28e   :  { %v2546_v10 = vpop.f32.mrf.mxu0 }
 0x28f   :  { %v2547_v33 = vadd.f32 %v2546_v10, %v1783_v41 }
 0x290   :  { %v2548_v12 = vpop.f32.mrf.mxu0 }
 0x292   :  { %v2549_v14 = vpop.f32.mrf.mxu0 }
 0x295   :  { %v2503_v17 = vpop.f32.mrf.mxu1 }
 0x296   :  { %v2504_v21 = vadd.f32 %v2503_v17, %v2463_v15 }
 0x297   :  { %v2505_v22 = vpop.f32.mrf.mxu1 }
 0x298   :  { %v2506_v23 = vadd.f32 %v2505_v22, %v2465_v18  ;;  %v2592_v24 = vmax.f32 %v2504_v21, 0.0 }
 0x299   :  { %v2507_v25 = vpop.f32.mrf.mxu1 }
 0x29a   :  { %v2593_v26 = vmax.f32 %v2506_v23, 0.0  ;;  %v2596_v29 = vpack.c.bf16 %v2592_v24, %v2592_v24 }
 0x29b   :  { %v2508_v27 = vpop.f32.mrf.mxu1 }
 0x29c   :  { %v2597_v28 = vpack.c.bf16 %v2593_v26, %v2593_v26 }
 0x29e   :  { %2894 = vmatprep.mubr.bf16.mxu0 %v2597_v28 }
 0x29f   :  { %2895 = vmatmul.mubr.bf16.vlgmr.msra.gmra.mxu0 %v2596_v29 }
 0x2d5   :  { %v2585_v32 = vpop.f32.mrf.mxu1 }
 0x2d6   :  { %v2586_v34 = vadd.f32 %v2585_v32, %v2545_v30 }
 0x2d7   :  { %v2587_v16 = vpop.f32.mrf.mxu1 }
 0x2d8   :  { %v2588_v35 = vadd.f32 %v2587_v16, %v2547_v33  ;;  %v2594_v37 = vmax.f32 %v2586_v34, 0.0 }
 0x2d9   :  { %v2589_v20 = vpop.f32.mrf.mxu1 }
 0x2da   :  { %v2595_v38 = vmax.f32 %v2588_v35, 0.0  ;;  %v2598_v42 = vpack.c.bf16 %v2594_v37, %v2594_v37 }
 0x2db   :  { %v2590_v52 = vpop.f32.mrf.mxu1 }
 0x2dc   :  { %v2599_v19 = vpack.c.bf16 %v2595_v38, %v2595_v38 }
 0x2de   :  { %2934 = vmatprep.mubr.bf16.mxu1 %v2599_v19 }
 0x2df   :  { %2935 = vmatmul.mubr.bf16.vlgmr.msra.gmra.mxu1 %v2598_v42 }
 0x35f   :  { %v3325_v43 = vpop.f32.mrf.mxu0 }
 0x361   :  { %v3326_v44 = vpop.f32.mrf.mxu0 }
 0x362   :  { %v3327_v39 = vadd.f32 %v3326_v44, %v3325_v43 }
 0x363   :  { %v3328_v31 = vpop.f32.mrf.mxu0 }
 0x364   :  { %v2897_v47 = vadd.f32 %v3327_v39, %v3276_v9 }
 0x365   :  { %v3329_v36 = vpop.f32.mrf.mxu0 }
 0x39f   :  { %v3347_v45 = vpop.f32.mrf.mxu1 }
 0x3a1   :  { %v3348_v46 = vpop.f32.mrf.mxu1 }
 0x3a2   :  { %v3349_v48 = vadd.f32 %v3348_v46, %v3347_v45 }
 0x3a3   :  { %v3350_v49 = vpop.f32.mrf.mxu1 }
 0x3a4   :  { %v2937_v50 = vadd.f32 %v3349_v48, %v2897_v47 }
 0x3a5   :  { %v3351_v51 = vpop.f32.mrf.mxu1 }
 0x3a6   :  { %2942 = vst [vmem:[%s4130_s5] sm:$0xff] %v2937_v50 }
 0x3a7   :  { %2947 = vsyncpa [#allocation3], 1 }
 0x3a8   :  { %2948 = vsyncpa [#allocation5], 1 }
 0x3a9   :  { %2949 = vsyncpa [#allocation8], 1 }

</bundles_post_ra>
